<compile_context>
chip_gen: v7x
topology: tpu7x:2x2x1
jax: 0.10.0
libtpu: 0.0.40
codegen_flags: <defaults>
</compile_context>

<pallas_src>
import functools
import math

import jax
import jax.numpy as jnp
from jax.experimental import pallas as pl
from jax.experimental.pallas import tpu as pltpu


def _bnn_fused_kernel(*refs, num_layers: int, prior_sig: float):
    """refs = [x, (w_mu,w_rho,b_mu,b_rho,eps_w,eps_b)*L, out, kld]."""
    x_ref = refs[0]
    out_ref = refs[1 + 6 * num_layers]
    kld_ref = refs[2 + 6 * num_layers]

    # Hoisted trace-time constants for the KL terms.
    sig_p_w = float(prior_sig)
    inv_sp2_w = 1.0 / (sig_p_w * sig_p_w)
    const_w = 2.0 * math.log(sig_p_w) - 1.0
    sig_p_b = 0.1
    inv_sp2_b = 1.0 / (sig_p_b * sig_p_b)
    const_b = 2.0 * math.log(sig_p_b) - 1.0

    h = x_ref[...]                                   # (B, in) f32
    total_kl = jnp.float32(0.0)

    for i in range(num_layers):                      # static unroll (fixed L)
        base = 1 + 6 * i
        w_mu = refs[base][...]                       # (K, N)
        w_rho = refs[base + 1][...]                  # (K, N)
        b_mu = refs[base + 2][...]                   # (1, N)
        b_rho = refs[base + 3][...]                  # (1, N)
        eps_w = refs[base + 4][...]                  # (B, N)
        eps_b = refs[base + 5][...]                  # (1, N)

        # std = 1e-6 + softplus(rho); std^2 is reused by the variance matmul
        # and by the KL term.
        std_w = 1e-6 + jax.nn.softplus(w_rho)
        std_b = 1e-6 + jax.nn.softplus(b_rho)
        std_w2 = std_w * std_w
        std_b2 = std_b * std_b

        # Mean path and variance path (two MXU matmuls on the resident tile).
        act_w_mu = jnp.dot(h, w_mu, preferred_element_type=jnp.float32)
        act_w_var = jnp.dot(h * h, std_w2, preferred_element_type=jnp.float32)
        act_w_std = jnp.sqrt(act_w_var)

        out = act_w_mu + act_w_std * eps_w + (b_mu + std_b * eps_b)
        if i < num_layers - 1:                       # hidden layers: tanh
            out = jnp.tanh(out)
        h = out                                      # stays on-chip

        # KL(q||p) with p = N(0, sig_p):
        #   0.5 * sum( 2*log(sig_p) - 2*log(std) - 1 + (std^2 + mu^2)/sig_p^2 )
        kld_w = 0.5 * jnp.sum(const_w - 2.0 * jnp.log(std_w)
                              + (std_w2 + w_mu * w_mu) * inv_sp2_w)
        kld_b = 0.5 * jnp.sum(const_b - 2.0 * jnp.log(std_b)
                              + (std_b2 + b_mu * b_mu) * inv_sp2_b)
        total_kl = total_kl + kld_w + kld_b

    out_ref[...] = h.astype(out_ref.dtype)
    kld_ref[0] = total_kl                            # single SMEM scalar store


def bnn_forward(x, params, eps, prior_sig):
    """Training-mode forward of the whole BNN in one pallas_call.

    Returns (output (B, out_dim), total_kl scalar).
    """
    num_layers = len(params)
    batch = x.shape[0]
    out_dim = params[-1][0].shape[1]

    inputs = [x]
    for (w_mu, w_rho, b_mu, b_rho), (eps_w, eps_b) in zip(params, eps):
        inputs += [w_mu, w_rho, b_mu, b_rho, eps_w, eps_b]

    # Advisory cost estimate: 2 matmuls per layer + elementwise; softplus/log/
    # tanh on the EUP; bytes = all operands + outputs.
    flops = 0
    transc = 0
    bytes_acc = x.size * x.dtype.itemsize
    for (w_mu, w_rho, b_mu, b_rho), (eps_w, eps_b) in zip(params, eps):
        k, n = w_mu.shape
        flops += 4 * batch * k * n + 8 * batch * n + 6 * k * n
        transc += 3 * (k * n + n) + batch * n
        for a in (w_mu, w_rho, b_mu, b_rho, eps_w, eps_b):
            bytes_acc += a.size * a.dtype.itemsize
    bytes_acc += batch * out_dim * 4 + 4

    kernel = functools.partial(_bnn_fused_kernel,
                               num_layers=num_layers,
                               prior_sig=float(prior_sig))
    vmem = pl.BlockSpec(memory_space=pltpu.MemorySpace.VMEM)
    smem = pl.BlockSpec(memory_space=pltpu.MemorySpace.SMEM)

    y, kld = pl.pallas_call(
        kernel,
        out_shape=(jax.ShapeDtypeStruct((batch, out_dim), jnp.float32),
                   jax.ShapeDtypeStruct((1,), jnp.float32)),
        in_specs=[vmem] * len(inputs),
        out_specs=(vmem, smem),
        cost_estimate=pl.CostEstimate(flops=flops,
                                      transcendentals=transc,
                                      bytes_accessed=bytes_acc),
    )(*inputs)
    return y, kld[0]


def init_bnn_params(key, input_dim, hidden_sizes, output_dim, nr_layers):
    """Deterministic init matching the PyTorch __init__ distributions."""
    dims = [input_dim] + [hidden_sizes] * nr_layers + [output_dim]
    params = []
    for i in range(len(dims) - 1):
        key, k_w, k_b = jax.random.split(key, 3)
        w_mu = jax.random.uniform(k_w, (dims[i], dims[i + 1]),
                                  minval=-0.01, maxval=0.01, dtype=jnp.float32)
        w_rho = jnp.full((dims[i], dims[i + 1]), -3.0, dtype=jnp.float32)
        b_mu = jax.random.uniform(k_b, (1, dims[i + 1]),
                                  minval=-0.01, maxval=0.01, dtype=jnp.float32)
        b_rho = jnp.full((1, dims[i + 1]), -3.0, dtype=jnp.float32)
        params.append((w_mu, w_rho, b_mu, b_rho))
    return params


def sample_eps(key, params, batch):
    """Deterministic N(0,1) noise for the reparameterization trick
    (activation-shaped, matching the PyTorch reference)."""
    eps = []
    for (w_mu, _, _, _) in params:
        key, k1, k2 = jax.random.split(key, 3)
        out_dim = w_mu.shape[1]
        eps_w = jax.random.normal(k1, (batch, out_dim), dtype=jnp.float32)
        eps_b = jax.random.normal(k2, (1, out_dim), dtype=jnp.float32)
        eps.append((eps_w, eps_b))
    return eps


def _bnn_forward_ref(x, params, eps, prior_sig):
    """Pure-JAX reference of the PyTorch forward (for a sanity check)."""
    net_kl = jnp.zeros((), dtype=jnp.float32)
    n = len(params)
    for i, (w_mu, w_rho, b_mu, b_rho) in enumerate(params):
        eps_w, eps_b = eps[i]
        std_w = 1e-6 + jax.nn.softplus(w_rho)
        std_b = 1e-6 + jax.nn.softplus(b_rho)
        act_mu = x @ w_mu
        act_std = jnp.sqrt((x * x) @ (std_w * std_w))
        out = act_mu + act_std * eps_w + (b_mu + std_b * eps_b)
        if i < n - 1:
            out = jnp.tanh(out)
        x = out
        kld_w = 0.5 * jnp.sum(2 * jnp.log(prior_sig / std_w) - 1
                              + (std_w / prior_sig) ** 2
                              + (w_mu / prior_sig) ** 2)
        kld_b = 0.5 * jnp.sum(2 * jnp.log(0.1 / std_b) - 1
                              + (std_b / 0.1) ** 2 + (b_mu / 0.1) ** 2)
        net_kl = net_kl + kld_w + kld_b
    return x, net_kl


if __name__ == "__main__":
    # BNN(input_dim=16, hidden=32, output_dim=8, nr_layers=2)
    #   -> layers 16->32 (tanh), 32->32 (tanh), 32->8 (linear).
    input_dim, hidden_sizes, output_dim, nr_layers = 16, 32, 8, 2
    prior_mu, prior_rho, prior_sig = 0, -3, 0.1
    batch = 8

    key = jax.random.PRNGKey(0)
    k_params, k_x, k_eps = jax.random.split(key, 3)

    params = init_bnn_params(k_params, input_dim, hidden_sizes,
                             output_dim, nr_layers)
    x = jax.random.normal(k_x, (batch, input_dim), dtype=jnp.float32)
    eps = sample_eps(k_eps, params, batch)

    out, net_kl = bnn_forward(x, params, eps, prior_sig)
    out = jax.block_until_ready(out)
    net_kl = jax.block_until_ready(net_kl)

    assert out.shape == (batch, output_dim)
    assert net_kl.shape == ()

    # Correctness check against the pure-JAX reference of the torch forward.
    out_ref, kl_ref = _bnn_forward_ref(x, params, eps, prior_sig)
    assert jnp.allclose(out, out_ref, atol=1e-5, rtol=1e-5)
    assert jnp.allclose(net_kl, kl_ref, atol=1e-3, rtol=1e-5)

    print("KERNEL_OK")
</pallas_src>

<mosaic_0001>
module attributes {stable_mosaic.version = 11 : i64} {
  func.func @_bnn_fused_kernel(%arg0: memref<8x16xf32, #tpu.memory_space<vmem>>, %arg1: memref<16x32xf32, #tpu.memory_space<vmem>>, %arg2: memref<16x32xf32, #tpu.memory_space<vmem>>, %arg3: memref<1x32xf32, #tpu.memory_space<vmem>>, %arg4: memref<1x32xf32, #tpu.memory_space<vmem>>, %arg5: memref<8x32xf32, #tpu.memory_space<vmem>>, %arg6: memref<1x32xf32, #tpu.memory_space<vmem>>, %arg7: memref<32x32xf32, #tpu.memory_space<vmem>>, %arg8: memref<32x32xf32, #tpu.memory_space<vmem>>, %arg9: memref<1x32xf32, #tpu.memory_space<vmem>>, %arg10: memref<1x32xf32, #tpu.memory_space<vmem>>, %arg11: memref<8x32xf32, #tpu.memory_space<vmem>>, %arg12: memref<1x32xf32, #tpu.memory_space<vmem>>, %arg13: memref<32x8xf32, #tpu.memory_space<vmem>>, %arg14: memref<32x8xf32, #tpu.memory_space<vmem>>, %arg15: memref<1x8xf32, #tpu.memory_space<vmem>>, %arg16: memref<1x8xf32, #tpu.memory_space<vmem>>, %arg17: memref<8x8xf32, #tpu.memory_space<vmem>>, %arg18: memref<1x8xf32, #tpu.memory_space<vmem>>, %arg19: memref<8x8xf32, #tpu.memory_space<vmem>>, %arg20: memref<1xf32, #tpu.memory_space<smem>>) attributes {dimension_semantics = [], scalar_prefetch = 0 : i64, scratch_operands = 0 : i64, tpu.core_type = #tpu.core_type<tc>} {
    %c0 = arith.constant 0 : index
    %c0_0 = arith.constant 0 : index
    %0 = vector.load %arg0[%c0, %c0_0] : memref<8x16xf32, #tpu.memory_space<vmem>>, vector<8x16xf32>
    %c0_1 = arith.constant 0 : index
    %c0_2 = arith.constant 0 : index
    %1 = vector.load %arg1[%c0_1, %c0_2] : memref<16x32xf32, #tpu.memory_space<vmem>>, vector<16x32xf32>
    %c0_3 = arith.constant 0 : index
    %c0_4 = arith.constant 0 : index
    %2 = vector.load %arg2[%c0_3, %c0_4] : memref<16x32xf32, #tpu.memory_space<vmem>>, vector<16x32xf32>
    %c0_5 = arith.constant 0 : index
    %c0_6 = arith.constant 0 : index
    %3 = vector.load %arg3[%c0_5, %c0_6] : memref<1x32xf32, #tpu.memory_space<vmem>>, vector<1x32xf32>
    %c0_7 = arith.constant 0 : index
    %c0_8 = arith.constant 0 : index
    %4 = vector.load %arg4[%c0_7, %c0_8] : memref<1x32xf32, #tpu.memory_space<vmem>>, vector<1x32xf32>
    %c0_9 = arith.constant 0 : index
    %c0_10 = arith.constant 0 : index
    %5 = vector.load %arg5[%c0_9, %c0_10] : memref<8x32xf32, #tpu.memory_space<vmem>>, vector<8x32xf32>
    %c0_11 = arith.constant 0 : index
    %c0_12 = arith.constant 0 : index
    %6 = vector.load %arg6[%c0_11, %c0_12] : memref<1x32xf32, #tpu.memory_space<vmem>>, vector<1x32xf32>
    %cst = arith.constant 0.000000e+00 : f32
    %7 = vector.broadcast %cst : f32 to vector<16x32xf32>
    %8 = arith.maximumf %2, %7 : vector<16x32xf32>
    %9 = vector.broadcast %cst : f32 to vector<16x32xf32>
    %10 = arith.subf %2, %9 : vector<16x32xf32>
    %11 = arith.cmpf one, %10, %10 : vector<16x32xf32>
    %12 = vector.broadcast %cst : f32 to vector<16x32xf32>
    %13 = arith.addf %2, %12 : vector<16x32xf32>
    %14 = math.absf %10 : vector<16x32xf32>
    %cst_13 = arith.constant 0.000000e+00 : f32
    %15 = vector.broadcast %cst_13 : f32 to vector<16x32xf32>
    %16 = arith.subf %15, %14 : vector<16x32xf32>
    %17 = math.exp %16 : vector<16x32xf32>
    %18 = math.log1p %17 : vector<16x32xf32>
    %19 = arith.addf %8, %18 : vector<16x32xf32>
    %20 = arith.select %11, %13, %19 : vector<16x32xi1>, vector<16x32xf32>
    %cst_14 = arith.constant 9.99999997E-7 : f32
    %21 = vector.broadcast %cst_14 : f32 to vector<16x32xf32>
    %22 = arith.addf %21, %20 : vector<16x32xf32>
    %cst_15 = arith.constant 0.000000e+00 : f32
    %23 = vector.broadcast %cst_15 : f32 to vector<1x32xf32>
    %24 = arith.maximumf %4, %23 : vector<1x32xf32>
    %25 = vector.broadcast %cst_15 : f32 to vector<1x32xf32>
    %26 = arith.subf %4, %25 : vector<1x32xf32>
    %27 = arith.cmpf one, %26, %26 : vector<1x32xf32>
    %28 = vector.broadcast %cst_15 : f32 to vector<1x32xf32>
    %29 = arith.addf %4, %28 : vector<1x32xf32>
    %30 = math.absf %26 : vector<1x32xf32>
    %cst_16 = arith.constant 0.000000e+00 : f32
    %31 = vector.broadcast %cst_16 : f32 to vector<1x32xf32>
    %32 = arith.subf %31, %30 : vector<1x32xf32>
    %33 = math.exp %32 : vector<1x32xf32>
    %34 = math.log1p %33 : vector<1x32xf32>
    %35 = arith.addf %24, %34 : vector<1x32xf32>
    %36 = arith.select %27, %29, %35 : vector<1x32xi1>, vector<1x32xf32>
    %cst_17 = arith.constant 9.99999997E-7 : f32
    %37 = vector.broadcast %cst_17 : f32 to vector<1x32xf32>
    %38 = arith.addf %37, %36 : vector<1x32xf32>
    %39 = arith.mulf %22, %22 : vector<16x32xf32>
    %40 = arith.mulf %38, %38 : vector<1x32xf32>
    %cst_18 = arith.constant dense<0.000000e+00> : vector<8x32xf32>
    %41 = tpu.matmul %0, %1, %cst_18 {dimension_numbers = #tpu.dot_dimension_numbers<[1], [0], [0], [1], [0, 0, 1, 1], [], []>} : vector<8x16xf32>, vector<16x32xf32>, vector<8x32xf32> -> vector<8x32xf32>
    %42 = arith.mulf %0, %0 : vector<8x16xf32>
    %cst_19 = arith.constant dense<0.000000e+00> : vector<8x32xf32>
    %43 = tpu.matmul %42, %39, %cst_19 {dimension_numbers = #tpu.dot_dimension_numbers<[1], [0], [0], [1], [0, 0, 1, 1], [], []>} : vector<8x16xf32>, vector<16x32xf32>, vector<8x32xf32> -> vector<8x32xf32>
    %44 = math.sqrt %43 : vector<8x32xf32>
    %45 = arith.mulf %44, %5 : vector<8x32xf32>
    %46 = arith.addf %41, %45 : vector<8x32xf32>
    %47 = arith.mulf %38, %6 : vector<1x32xf32>
    %48 = arith.addf %3, %47 : vector<1x32xf32>
    %49 = vector.broadcast %48 : vector<1x32xf32> to vector<8x32xf32>
    %50 = arith.addf %46, %49 : vector<8x32xf32>
    %51 = math.tanh %50 : vector<8x32xf32>
    %52 = math.log %22 : vector<16x32xf32>
    %cst_20 = arith.constant 2.000000e+00 : f32
    %53 = vector.broadcast %cst_20 : f32 to vector<16x32xf32>
    %54 = arith.mulf %53, %52 : vector<16x32xf32>
    %cst_21 = arith.constant -5.60517025 : f32
    %55 = vector.broadcast %cst_21 : f32 to vector<16x32xf32>
    %56 = arith.subf %55, %54 : vector<16x32xf32>
    %57 = arith.mulf %1, %1 : vector<16x32xf32>
    %58 = arith.addf %39, %57 : vector<16x32xf32>
    %cst_22 = arith.constant 1.000000e+02 : f32
    %59 = vector.broadcast %cst_22 : f32 to vector<16x32xf32>
    %60 = arith.mulf %58, %59 : vector<16x32xf32>
    %61 = arith.addf %56, %60 : vector<16x32xf32>
    %62 = vector.shape_cast %61 : vector<16x32xf32> to vector<1x16x32xf32>
    %cst_23 = arith.constant dense<0.000000e+00> : vector<1xf32>
    %63 = vector.multi_reduction <add>, %62, %cst_23 [1, 2] : vector<1x16x32xf32> to vector<1xf32>
    %64 = vector.shape_cast %63 : vector<1xf32> to vector<1x1x1xf32>
    %65 = vector.extract %64[0, 0, 0] : f32 from vector<1x1x1xf32>
    %cst_24 = arith.constant 5.000000e-01 : f32
    %66 = arith.mulf %cst_24, %65 : f32
    %67 = math.log %38 : vector<1x32xf32>
    %cst_25 = arith.constant 2.000000e+00 : f32
    %68 = vector.broadcast %cst_25 : f32 to vector<1x32xf32>
    %69 = arith.mulf %68, %67 : vector<1x32xf32>
    %cst_26 = arith.constant -5.60517025 : f32
    %70 = vector.broadcast %cst_26 : f32 to vector<1x32xf32>
    %71 = arith.subf %70, %69 : vector<1x32xf32>
    %72 = arith.mulf %3, %3 : vector<1x32xf32>
    %73 = arith.addf %40, %72 : vector<1x32xf32>
    %cst_27 = arith.constant 1.000000e+02 : f32
    %74 = vector.broadcast %cst_27 : f32 to vector<1x32xf32>
    %75 = arith.mulf %73, %74 : vector<1x32xf32>
    %76 = arith.addf %71, %75 : vector<1x32xf32>
    %77 = vector.shape_cast %76 : vector<1x32xf32> to vector<1x1x32xf32>
    %cst_28 = arith.constant dense<0.000000e+00> : vector<1xf32>
    %78 = vector.multi_reduction <add>, %77, %cst_28 [1, 2] : vector<1x1x32xf32> to vector<1xf32>
    %79 = vector.shape_cast %78 : vector<1xf32> to vector<1x1x1xf32>
    %80 = vector.extract %79[0, 0, 0] : f32 from vector<1x1x1xf32>
    %cst_29 = arith.constant 5.000000e-01 : f32
    %81 = arith.mulf %cst_29, %80 : f32
    %cst_30 = arith.constant 0.000000e+00 : f32
    %82 = arith.addf %cst_30, %66 : f32
    %83 = arith.addf %82, %81 : f32
    %c0_31 = arith.constant 0 : index
    %c0_32 = arith.constant 0 : index
    %84 = vector.load %arg7[%c0_31, %c0_32] : memref<32x32xf32, #tpu.memory_space<vmem>>, vector<32x32xf32>
    %c0_33 = arith.constant 0 : index
    %c0_34 = arith.constant 0 : index
    %85 = vector.load %arg8[%c0_33, %c0_34] : memref<32x32xf32, #tpu.memory_space<vmem>>, vector<32x32xf32>
    %c0_35 = arith.constant 0 : index
    %c0_36 = arith.constant 0 : index
    %86 = vector.load %arg9[%c0_35, %c0_36] : memref<1x32xf32, #tpu.memory_space<vmem>>, vector<1x32xf32>
    %c0_37 = arith.constant 0 : index
    %c0_38 = arith.constant 0 : index
    %87 = vector.load %arg10[%c0_37, %c0_38] : memref<1x32xf32, #tpu.memory_space<vmem>>, vector<1x32xf32>
    %c0_39 = arith.constant 0 : index
    %c0_40 = arith.constant 0 : index
    %88 = vector.load %arg11[%c0_39, %c0_40] : memref<8x32xf32, #tpu.memory_space<vmem>>, vector<8x32xf32>
    %c0_41 = arith.constant 0 : index
    %c0_42 = arith.constant 0 : index
    %89 = vector.load %arg12[%c0_41, %c0_42] : memref<1x32xf32, #tpu.memory_space<vmem>>, vector<1x32xf32>
    %cst_43 = arith.constant 0.000000e+00 : f32
    %90 = vector.broadcast %cst_43 : f32 to vector<32x32xf32>
    %91 = arith.maximumf %85, %90 : vector<32x32xf32>
    %92 = vector.broadcast %cst_43 : f32 to vector<32x32xf32>
    %93 = arith.subf %85, %92 : vector<32x32xf32>
    %94 = arith.cmpf one, %93, %93 : vector<32x32xf32>
    %95 = vector.broadcast %cst_43 : f32 to vector<32x32xf32>
    %96 = arith.addf %85, %95 : vector<32x32xf32>
    %97 = math.absf %93 : vector<32x32xf32>
    %cst_44 = arith.constant 0.000000e+00 : f32
    %98 = vector.broadcast %cst_44 : f32 to vector<32x32xf32>
    %99 = arith.subf %98, %97 : vector<32x32xf32>
    %100 = math.exp %99 : vector<32x32xf32>
    %101 = math.log1p %100 : vector<32x32xf32>
    %102 = arith.addf %91, %101 : vector<32x32xf32>
    %103 = arith.select %94, %96, %102 : vector<32x32xi1>, vector<32x32xf32>
    %cst_45 = arith.constant 9.99999997E-7 : f32
    %104 = vector.broadcast %cst_45 : f32 to vector<32x32xf32>
    %105 = arith.addf %104, %103 : vector<32x32xf32>
    %cst_46 = arith.constant 0.000000e+00 : f32
    %106 = vector.broadcast %cst_46 : f32 to vector<1x32xf32>
    %107 = arith.maximumf %87, %106 : vector<1x32xf32>
    %108 = vector.broadcast %cst_46 : f32 to vector<1x32xf32>
    %109 = arith.subf %87, %108 : vector<1x32xf32>
    %110 = arith.cmpf one, %109, %109 : vector<1x32xf32>
    %111 = vector.broadcast %cst_46 : f32 to vector<1x32xf32>
    %112 = arith.addf %87, %111 : vector<1x32xf32>
    %113 = math.absf %109 : vector<1x32xf32>
    %cst_47 = arith.constant 0.000000e+00 : f32
    %114 = vector.broadcast %cst_47 : f32 to vector<1x32xf32>
    %115 = arith.subf %114, %113 : vector<1x32xf32>
    %116 = math.exp %115 : vector<1x32xf32>
    %117 = math.log1p %116 : vector<1x32xf32>
    %118 = arith.addf %107, %117 : vector<1x32xf32>
    %119 = arith.select %110, %112, %118 : vector<1x32xi1>, vector<1x32xf32>
    %cst_48 = arith.constant 9.99999997E-7 : f32
    %120 = vector.broadcast %cst_48 : f32 to vector<1x32xf32>
    %121 = arith.addf %120, %119 : vector<1x32xf32>
    %122 = arith.mulf %105, %105 : vector<32x32xf32>
    %123 = arith.mulf %121, %121 : vector<1x32xf32>
    %cst_49 = arith.constant dense<0.000000e+00> : vector<8x32xf32>
    %124 = tpu.matmul %51, %84, %cst_49 {dimension_numbers = #tpu.dot_dimension_numbers<[1], [0], [0], [1], [0, 0, 1, 1], [], []>} : vector<8x32xf32>, vector<32x32xf32>, vector<8x32xf32> -> vector<8x32xf32>
    %125 = arith.mulf %51, %51 : vector<8x32xf32>
    %cst_50 = arith.constant dense<0.000000e+00> : vector<8x32xf32>
    %126 = tpu.matmul %125, %122, %cst_50 {dimension_numbers = #tpu.dot_dimension_numbers<[1], [0], [0], [1], [0, 0, 1, 1], [], []>} : vector<8x32xf32>, vector<32x32xf32>, vector<8x32xf32> -> vector<8x32xf32>
    %127 = math.sqrt %126 : vector<8x32xf32>
    %128 = arith.mulf %127, %88 : vector<8x32xf32>
    %129 = arith.addf %124, %128 : vector<8x32xf32>
    %130 = arith.mulf %121, %89 : vector<1x32xf32>
    %131 = arith.addf %86, %130 : vector<1x32xf32>
    %132 = vector.broadcast %131 : vector<1x32xf32> to vector<8x32xf32>
    %133 = arith.addf %129, %132 : vector<8x32xf32>
    %134 = math.tanh %133 : vector<8x32xf32>
    %135 = math.log %105 : vector<32x32xf32>
    %cst_51 = arith.constant 2.000000e+00 : f32
    %136 = vector.broadcast %cst_51 : f32 to vector<32x32xf32>
    %137 = arith.mulf %136, %135 : vector<32x32xf32>
    %cst_52 = arith.constant -5.60517025 : f32
    %138 = vector.broadcast %cst_52 : f32 to vector<32x32xf32>
    %139 = arith.subf %138, %137 : vector<32x32xf32>
    %140 = arith.mulf %84, %84 : vector<32x32xf32>
    %141 = arith.addf %122, %140 : vector<32x32xf32>
    %cst_53 = arith.constant 1.000000e+02 : f32
    %142 = vector.broadcast %cst_53 : f32 to vector<32x32xf32>
    %143 = arith.mulf %141, %142 : vector<32x32xf32>
    %144 = arith.addf %139, %143 : vector<32x32xf32>
    %145 = vector.shape_cast %144 : vector<32x32xf32> to vector<1x32x32xf32>
    %cst_54 = arith.constant dense<0.000000e+00> : vector<1xf32>
    %146 = vector.multi_reduction <add>, %145, %cst_54 [1, 2] : vector<1x32x32xf32> to vector<1xf32>
    %147 = vector.shape_cast %146 : vector<1xf32> to vector<1x1x1xf32>
    %148 = vector.extract %147[0, 0, 0] : f32 from vector<1x1x1xf32>
    %cst_55 = arith.constant 5.000000e-01 : f32
    %149 = arith.mulf %cst_55, %148 : f32
    %150 = math.log %121 : vector<1x32xf32>
    %cst_56 = arith.constant 2.000000e+00 : f32
    %151 = vector.broadcast %cst_56 : f32 to vector<1x32xf32>
    %152 = arith.mulf %151, %150 : vector<1x32xf32>
    %cst_57 = arith.constant -5.60517025 : f32
    %153 = vector.broadcast %cst_57 : f32 to vector<1x32xf32>
    %154 = arith.subf %153, %152 : vector<1x32xf32>
    %155 = arith.mulf %86, %86 : vector<1x32xf32>
    %156 = arith.addf %123, %155 : vector<1x32xf32>
    %cst_58 = arith.constant 1.000000e+02 : f32
    %157 = vector.broadcast %cst_58 : f32 to vector<1x32xf32>
    %158 = arith.mulf %156, %157 : vector<1x32xf32>
    %159 = arith.addf %154, %158 : vector<1x32xf32>
    %160 = vector.shape_cast %159 : vector<1x32xf32> to vector<1x1x32xf32>
    %cst_59 = arith.constant dense<0.000000e+00> : vector<1xf32>
    %161 = vector.multi_reduction <add>, %160, %cst_59 [1, 2] : vector<1x1x32xf32> to vector<1xf32>
    %162 = vector.shape_cast %161 : vector<1xf32> to vector<1x1x1xf32>
    %163 = vector.extract %162[0, 0, 0] : f32 from vector<1x1x1xf32>
    %cst_60 = arith.constant 5.000000e-01 : f32
    %164 = arith.mulf %cst_60, %163 : f32
    %165 = arith.addf %83, %149 : f32
    %166 = arith.addf %165, %164 : f32
    %c0_61 = arith.constant 0 : index
    %c0_62 = arith.constant 0 : index
    %167 = vector.load %arg13[%c0_61, %c0_62] : memref<32x8xf32, #tpu.memory_space<vmem>>, vector<32x8xf32>
    %c0_63 = arith.constant 0 : index
    %c0_64 = arith.constant 0 : index
    %168 = vector.load %arg14[%c0_63, %c0_64] : memref<32x8xf32, #tpu.memory_space<vmem>>, vector<32x8xf32>
    %c0_65 = arith.constant 0 : index
    %c0_66 = arith.constant 0 : index
    %169 = vector.load %arg15[%c0_65, %c0_66] : memref<1x8xf32, #tpu.memory_space<vmem>>, vector<1x8xf32>
    %c0_67 = arith.constant 0 : index
    %c0_68 = arith.constant 0 : index
    %170 = vector.load %arg16[%c0_67, %c0_68] : memref<1x8xf32, #tpu.memory_space<vmem>>, vector<1x8xf32>
    %c0_69 = arith.constant 0 : index
    %c0_70 = arith.constant 0 : index
    %171 = vector.load %arg17[%c0_69, %c0_70] : memref<8x8xf32, #tpu.memory_space<vmem>>, vector<8x8xf32>
    %c0_71 = arith.constant 0 : index
    %c0_72 = arith.constant 0 : index
    %172 = vector.load %arg18[%c0_71, %c0_72] : memref<1x8xf32, #tpu.memory_space<vmem>>, vector<1x8xf32>
    %cst_73 = arith.constant 0.000000e+00 : f32
    %173 = vector.broadcast %cst_73 : f32 to vector<32x8xf32>
    %174 = arith.maximumf %168, %173 : vector<32x8xf32>
    %175 = vector.broadcast %cst_73 : f32 to vector<32x8xf32>
    %176 = arith.subf %168, %175 : vector<32x8xf32>
    %177 = arith.cmpf one, %176, %176 : vector<32x8xf32>
    %178 = vector.broadcast %cst_73 : f32 to vector<32x8xf32>
    %179 = arith.addf %168, %178 : vector<32x8xf32>
    %180 = math.absf %176 : vector<32x8xf32>
    %cst_74 = arith.constant 0.000000e+00 : f32
    %181 = vector.broadcast %cst_74 : f32 to vector<32x8xf32>
    %182 = arith.subf %181, %180 : vector<32x8xf32>
    %183 = math.exp %182 : vector<32x8xf32>
    %184 = math.log1p %183 : vector<32x8xf32>
    %185 = arith.addf %174, %184 : vector<32x8xf32>
    %186 = arith.select %177, %179, %185 : vector<32x8xi1>, vector<32x8xf32>
    %cst_75 = arith.constant 9.99999997E-7 : f32
    %187 = vector.broadcast %cst_75 : f32 to vector<32x8xf32>
    %188 = arith.addf %187, %186 : vector<32x8xf32>
    %cst_76 = arith.constant 0.000000e+00 : f32
    %189 = vector.broadcast %cst_76 : f32 to vector<1x8xf32>
    %190 = arith.maximumf %170, %189 : vector<1x8xf32>
    %191 = vector.broadcast %cst_76 : f32 to vector<1x8xf32>
    %192 = arith.subf %170, %191 : vector<1x8xf32>
    %193 = arith.cmpf one, %192, %192 : vector<1x8xf32>
    %194 = vector.broadcast %cst_76 : f32 to vector<1x8xf32>
    %195 = arith.addf %170, %194 : vector<1x8xf32>
    %196 = math.absf %192 : vector<1x8xf32>
    %cst_77 = arith.constant 0.000000e+00 : f32
    %197 = vector.broadcast %cst_77 : f32 to vector<1x8xf32>
    %198 = arith.subf %197, %196 : vector<1x8xf32>
    %199 = math.exp %198 : vector<1x8xf32>
    %200 = math.log1p %199 : vector<1x8xf32>
    %201 = arith.addf %190, %200 : vector<1x8xf32>
    %202 = arith.select %193, %195, %201 : vector<1x8xi1>, vector<1x8xf32>
    %cst_78 = arith.constant 9.99999997E-7 : f32
    %203 = vector.broadcast %cst_78 : f32 to vector<1x8xf32>
    %204 = arith.addf %203, %202 : vector<1x8xf32>
    %205 = arith.mulf %188, %188 : vector<32x8xf32>
    %206 = arith.mulf %204, %204 : vector<1x8xf32>
    %cst_79 = arith.constant dense<0.000000e+00> : vector<8x8xf32>
    %207 = tpu.matmul %134, %167, %cst_79 {dimension_numbers = #tpu.dot_dimension_numbers<[1], [0], [0], [1], [0, 0, 1, 1], [], []>} : vector<8x32xf32>, vector<32x8xf32>, vector<8x8xf32> -> vector<8x8xf32>
    %208 = arith.mulf %134, %134 : vector<8x32xf32>
    %cst_80 = arith.constant dense<0.000000e+00> : vector<8x8xf32>
    %209 = tpu.matmul %208, %205, %cst_80 {dimension_numbers = #tpu.dot_dimension_numbers<[1], [0], [0], [1], [0, 0, 1, 1], [], []>} : vector<8x32xf32>, vector<32x8xf32>, vector<8x8xf32> -> vector<8x8xf32>
    %210 = math.sqrt %209 : vector<8x8xf32>
    %211 = arith.mulf %210, %171 : vector<8x8xf32>
    %212 = arith.addf %207, %211 : vector<8x8xf32>
    %213 = arith.mulf %204, %172 : vector<1x8xf32>
    %214 = arith.addf %169, %213 : vector<1x8xf32>
    %215 = vector.broadcast %214 : vector<1x8xf32> to vector<8x8xf32>
    %216 = arith.addf %212, %215 : vector<8x8xf32>
    %217 = math.log %188 : vector<32x8xf32>
    %cst_81 = arith.constant 2.000000e+00 : f32
    %218 = vector.broadcast %cst_81 : f32 to vector<32x8xf32>
    %219 = arith.mulf %218, %217 : vector<32x8xf32>
    %cst_82 = arith.constant -5.60517025 : f32
    %220 = vector.broadcast %cst_82 : f32 to vector<32x8xf32>
    %221 = arith.subf %220, %219 : vector<32x8xf32>
    %222 = arith.mulf %167, %167 : vector<32x8xf32>
    %223 = arith.addf %205, %222 : vector<32x8xf32>
    %cst_83 = arith.constant 1.000000e+02 : f32
    %224 = vector.broadcast %cst_83 : f32 to vector<32x8xf32>
    %225 = arith.mulf %223, %224 : vector<32x8xf32>
    %226 = arith.addf %221, %225 : vector<32x8xf32>
    %227 = vector.shape_cast %226 : vector<32x8xf32> to vector<1x32x8xf32>
    %cst_84 = arith.constant dense<0.000000e+00> : vector<1xf32>
    %228 = vector.multi_reduction <add>, %227, %cst_84 [1, 2] : vector<1x32x8xf32> to vector<1xf32>
    %229 = vector.shape_cast %228 : vector<1xf32> to vector<1x1x1xf32>
    %230 = vector.extract %229[0, 0, 0] : f32 from vector<1x1x1xf32>
    %cst_85 = arith.constant 5.000000e-01 : f32
    %231 = arith.mulf %cst_85, %230 : f32
    %232 = math.log %204 : vector<1x8xf32>
    %cst_86 = arith.constant 2.000000e+00 : f32
    %233 = vector.broadcast %cst_86 : f32 to vector<1x8xf32>
    %234 = arith.mulf %233, %232 : vector<1x8xf32>
    %cst_87 = arith.constant -5.60517025 : f32
    %235 = vector.broadcast %cst_87 : f32 to vector<1x8xf32>
    %236 = arith.subf %235, %234 : vector<1x8xf32>
    %237 = arith.mulf %169, %169 : vector<1x8xf32>
    %238 = arith.addf %206, %237 : vector<1x8xf32>
    %cst_88 = arith.constant 1.000000e+02 : f32
    %239 = vector.broadcast %cst_88 : f32 to vector<1x8xf32>
    %240 = arith.mulf %238, %239 : vector<1x8xf32>
    %241 = arith.addf %236, %240 : vector<1x8xf32>
    %242 = vector.shape_cast %241 : vector<1x8xf32> to vector<1x1x8xf32>
    %cst_89 = arith.constant dense<0.000000e+00> : vector<1xf32>
    %243 = vector.multi_reduction <add>, %242, %cst_89 [1, 2] : vector<1x1x8xf32> to vector<1xf32>
    %244 = vector.shape_cast %243 : vector<1xf32> to vector<1x1x1xf32>
    %245 = vector.extract %244[0, 0, 0] : f32 from vector<1x1x1xf32>
    %cst_90 = arith.constant 5.000000e-01 : f32
    %246 = arith.mulf %cst_90, %245 : f32
    %247 = arith.addf %166, %231 : f32
    %248 = arith.addf %247, %246 : f32
    %c0_91 = arith.constant 0 : index
    %c0_92 = arith.constant 0 : index
    %249 = vector.load %arg19[%c0_91, %c0_92] : memref<8x8xf32, #tpu.memory_space<vmem>>, vector<8x8xf32>
    tpu.vector_store %arg19[%c0_91, %c0_92], %216 {strides = array<i32>} : memref<8x8xf32, #tpu.memory_space<vmem>>, vector<8x8xf32>,
    %c0_93 = arith.constant 0 : index
    %250 = memref.load %arg20[%c0_93] : memref<1xf32, #tpu.memory_space<smem>>
    memref.store %248, %arg20[%c0_93] : memref<1xf32, #tpu.memory_space<smem>>
    return
  }
}

</mosaic_0001>

<bundles_post_ra>
// kernel: tpu_custom_call.1
= control target key start
LH: loop header
LB: loop body
LE: loop exit
PB: predicated region body
PF: predicated region fallthrough
CT: control target
= control target key end

     0   :  { %s2104_s0 = inlined_call_operand.hbm [shape: f32[8,16], index: 0, kind: input, shape index: {}]   ;;  %s2105_s1 = inlined_call_operand.vmem [shape: f32[16,32], index: 1, kind: input, shape index: {}]   ;;  %s2106_s2 = inlined_call_operand.hbm [shape: f32[16,32], index: 2, kind: input, shape index: {}]   ;;  %s2107_s3 = inlined_call_operand.vmem [shape: f32[1,32], index: 3, kind: input, shape index: {}]   ;;  %s2108_s4 = inlined_call_operand.vmem [shape: f32[1,32], index: 4, kind: input, shape index: {}]   ;;  %s2109_s5 = inlined_call_operand.hbm [shape: f32[8,32], index: 5, kind: input, shape index: {}]   ;;  %s2110_s6 = inlined_call_operand.hbm [shape: f32[1,32], index: 6, kind: input, shape index: {}]   ;;  %s2111_s7 = inlined_call_operand.vmem [shape: f32[32,32], index: 7, kind: input, shape index: {}]   ;;  %s2112_s8 = inlined_call_operand.vmem [shape: f32[32,32], index: 8, kind: input, shape index: {}]   ;;  %s2113_s9 = inlined_call_operand.hbm [shape: f32[1,32], index: 9, kind: input, shape index: {}]   ;;  %s2114_s10 = inlined_call_operand.vmem [shape: f32[1,32], index: 10, kind: input, shape index: {}]   ;;  %s2115_s11 = inlined_call_operand.vmem [shape: f32[8,32], index: 11, kind: input, shape index: {}]   ;;  %s2116_s12 = inlined_call_operand.vmem [shape: f32[1,32], index: 12, kind: input, shape index: {}]   ;;  %s2117_s13 = inlined_call_operand.vmem [shape: f32[32,8], index: 13, kind: input, shape index: {}]   ;;  %s2118_s14 = inlined_call_operand.vmem [shape: f32[32,8], index: 14, kind: input, shape index: {}]   ;;  %s2119_s15 = inlined_call_operand.vmem [shape: f32[1,8], index: 15, kind: input, shape index: {}]   ;;  %s2120_s16 = inlined_call_operand.vmem [shape: f32[1,8], index: 16, kind: input, shape index: {}]   ;;  %s2121_s17 = inlined_call_operand.vmem [shape: f32[8,8], index: 17, kind: input, shape index: {}]   ;;  %s2122_s18 = inlined_call_operand.vmem [shape: f32[1,8], index: 18, kind: input, shape index: {}]   ;;  %s2123_s19 = inlined_call_operand.hbm [shape: f32[8,8], index: 19, kind: output, shape index: {0}]   ;;  %s2124_s20 = inlined_call_operand.hbm [shape: f32[1], index: 20, kind: output, shape index: {1}]  }
   0x1   :  { %2129 = sst [smem:[#allocation19_spill]] %s2104_s0 }
   0x2   :  { %2130 = sst [smem:[#allocation20_spill]] %s2105_s1 }
   0x3   :  { %2131 = sst [smem:[#allocation21_spill]] %s2106_s2 }
   0x4   :  { %2132 = sst [smem:[#allocation22_spill]] %s2107_s3 }
   0x5   :  { %2133 = sst [smem:[#allocation23_spill]] %s2108_s4 }
   0x6   :  { %2134 = sst [smem:[#allocation24_spill]] %s2121_s17 }
   0x7   :  { %2135 = sst [smem:[#allocation25_spill]] %s2123_s19 }
   0x8   :  { %26 = vsyncpa [#allocation3], 0 }
   0x9   :  { %27 = vsyncpa [#allocation7], 0 }
   0xa   :  { %28 = vsyncpa [#allocation10], 0 }
   0xb   :  { %29 = vsyncpa [#allocation4], 0 }
   0xc   :  { %30 = vsyncpa [#allocation5], 0  ;;  %s1525_s1 = smov [#allocation6]   ;;  %s2136_s2 = sld [smem:[#allocation21_spill]] }
   0xd   :  { %s48_s22 = sshll.u32 %s1525_s1, 4  ;;  %s49_s22 = int_to_ptr.vmem [resolvable:$true] %s48_s22 }
  0x12   :  { %s1373_s25 = scalar_lea.hbm %s2136_s2, 256 }
  0x13   :  { %p1374_p0 = scmp.ne.s32.totalorder %s2136_s2, %s1373_s25  ;;  %p1377_p1 = scmp.lt.u32.totalorder %s1373_s25, %s2136_s2 }
  0x15   :  { %p1379_p2 = pnand %p1377_p1, %p1374_p0 }
  0x17   :  { %1382 = shalt.err (!%p1379_p2)
}
  0x18   :  { %s1383_s4 = scalar_lea.vmem %s49_s22, 256  ;;  %p1388_p4 = scmp.lt.s32.totalorder %s49_s22, %s49_s22 }
  0x19   :  { %p1384_p3 = scmp.ne.s32.totalorder %s49_s22, %s1383_s4  ;;  %p1389_p5 = scmp.lt.s32.totalorder %s1383_s4, %s1383_s4 }
  0x1b   :  { %p1390_p6 = por %p1389_p5, %p1388_p4 }
  0x1d   :  { %p1391_p7 = pnand %p1390_p6, %p1384_p3 }
  0x1f   :  { %1394 = shalt.err (!%p1391_p7)
}
  0x20   :  { %s1526_s29 = smov 128   ;;  %s1527_s30 = smov 8  }
  0x21   :  { %54 = dma.hbm_to_vmem [thread:$0]  %s2136_s2, 256, %s49_s22, [#allocation7], %s1526_s29, %s1526_s29, %s1527_s30  }
  0x22   :  { %s1528_s1 = smov [#allocation9]   ;;  %s1529_s24 = smov [#allocation2]  }
  0x23   :  { %s75_s23 = sshll.u32 %s1528_s1, 4  ;;  %s37_s25 = sshll.u32 %s1529_s24, 4  ;;  %s76_s23 = int_to_ptr.vmem [resolvable:$true] %s75_s23  ;;  %s38_s25 = int_to_ptr.vmem [resolvable:$true] %s37_s25 }
  0x24   :  { %s1395_s27 = scalar_lea.hbm %s2110_s6, 16 }
  0x25   :  { %p1396_p8 = scmp.ne.s32.totalorder %s2110_s6, %s1395_s27  ;;  %p1399_p9 = scmp.lt.u32.totalorder %s1395_s27, %s2110_s6 }
  0x27   :  { %p1401_p10 = pnand %p1399_p9, %p1396_p8 }
  0x29   :  { %1404 = shalt.err (!%p1401_p10)
}
  0x2a   :  { %s1405_s22 = scalar_lea.vmem %s76_s23, 16  ;;  %s1409_s2 = scalar_lea.vmem %s76_s23, 32 }
  0x2b   :  { %p1406_p11 = scmp.ne.s32.totalorder %s76_s23, %s1405_s22  ;;  %p1410_p12 = scmp.lt.s32.totalorder %s76_s23, %s76_s23 }
  0x2c   :  { %p1411_p13 = scmp.lt.s32.totalorder %s1409_s2, %s1405_s22 }
  0x2e   :  { %p1412_p0 = por %p1411_p13, %p1410_p12 }
  0x30   :  { %p1413_p1 = pnand %p1412_p0, %p1406_p11 }
  0x32   :  { %1416 = shalt.err (!%p1413_p1)
}
  0x33   :  { %78 = dma.hbm_to_vmem [thread:$0]  %s2110_s6, 16, %s76_s23, [#allocation10]  }
  0x34   :  { %s2137_s1 = sld [smem:[#allocation19_spill]] }
  0x3a   :  { %s1417_s17 = scalar_lea.hbm %s2137_s1, 128 }
  0x3b   :  { %p1418_p2 = scmp.ne.s32.totalorder %s2137_s1, %s1417_s17  ;;  %p1421_p3 = scmp.lt.u32.totalorder %s1417_s17, %s2137_s1 }
  0x3d   :  { %p1423_p4 = pnand %p1421_p3, %p1418_p2 }
  0x3f   :  { %1426 = shalt.err (!%p1423_p4)
}
  0x40   :  { %s1427_s27 = scalar_lea.vmem %s38_s25, 128  ;;  %p1432_p6 = scmp.lt.s32.totalorder %s38_s25, %s38_s25 }
  0x41   :  { %p1428_p5 = scmp.ne.s32.totalorder %s38_s25, %s1427_s27  ;;  %p1433_p7 = scmp.lt.s32.totalorder %s1427_s27, %s1427_s27 }
  0x43   :  { %p1434_p8 = por %p1433_p7, %p1432_p6 }
  0x45   :  { %p1435_p9 = pnand %p1434_p8, %p1428_p5 }
  0x47   :  { %1438 = shalt.err (!%p1435_p9)
}
  0x48   :  { %40 = dma.hbm_to_vmem [thread:$0]  %s2137_s1, 128, %s38_s25, [#allocation3]  }
  0x49   :  { %s1530_s28 = smov [#allocation8]   ;;  %s1531_s22 = smov [#allocation11]  }
  0x4a   :  { %s65_s4 = sshll.u32 %s1530_s28, 4  ;;  %s89_s2 = sshll.u32 %s1531_s22, 4  ;;  %s66_s4 = int_to_ptr.vmem [resolvable:$true] %s65_s4  ;;  %s90_s2 = int_to_ptr.vmem [resolvable:$true] %s89_s2 }
  0x4b   :  { %s1439_s0 = scalar_lea.hbm %s2109_s5, 128 }
  0x4c   :  { %p1440_p10 = scmp.ne.s32.totalorder %s2109_s5, %s1439_s0  ;;  %p1443_p11 = scmp.lt.u32.totalorder %s1439_s0, %s2109_s5 }
  0x4e   :  { %p1445_p12 = pnand %p1443_p11, %p1440_p10 }
  0x50   :  { %1448 = shalt.err (!%p1445_p12)
}
  0x51   :  { %s1449_s25 = scalar_lea.vmem %s66_s4, 128  ;;  %p1454_p0 = scmp.lt.s32.totalorder %s66_s4, %s66_s4 }
  0x52   :  { %p1450_p13 = scmp.ne.s32.totalorder %s66_s4, %s1449_s25  ;;  %p1455_p1 = scmp.lt.s32.totalorder %s1449_s25, %s1449_s25 }
  0x54   :  { %p1456_p2 = por %p1455_p1, %p1454_p0 }
  0x56   :  { %p1457_p3 = pnand %p1456_p2, %p1450_p13 }
  0x58   :  { %1460 = shalt.err (!%p1457_p3)
}
  0x59   :  { %68 = dma.hbm_to_vmem [thread:$0]  %s2109_s5, 128, %s66_s4, [#allocation7]  }
  0x5a   :  { %s1461_s6 = scalar_lea.hbm %s2113_s9, 16 }
  0x5b   :  { %p1462_p4 = scmp.ne.s32.totalorder %s2113_s9, %s1461_s6  ;;  %p1465_p5 = scmp.lt.u32.totalorder %s1461_s6, %s2113_s9 }
  0x5d   :  { %p1467_p6 = pnand %p1465_p5, %p1462_p4 }
  0x5f   :  { %1470 = shalt.err (!%p1467_p6)
}
  0x60   :  { %s1471_s30 = scalar_lea.vmem %s90_s2, 16  ;;  %s1475_s0 = scalar_lea.vmem %s90_s2, 32 }
  0x61   :  { %p1472_p7 = scmp.ne.s32.totalorder %s90_s2, %s1471_s30  ;;  %p1476_p8 = scmp.lt.s32.totalorder %s90_s2, %s90_s2 }
  0x62   :  { %p1477_p9 = scmp.lt.s32.totalorder %s1475_s0, %s1471_s30 }
  0x64   :  { %p1478_p10 = por %p1477_p9, %p1476_p8 }
  0x66   :  { %p1479_p11 = pnand %p1478_p10, %p1472_p7 }
  0x68   :  { %1482 = shalt.err (!%p1479_p11)
}
  0x69   :  { %92 = dma.hbm_to_vmem [thread:$0]  %s2113_s9, 16, %s90_s2, [#allocation10]  }
  0x6a   :  { %1515 = dma.done.wait [#allocation3], 128  }
  0x6b   :  { %1516 = vsyncadd [#allocation3], 4294967168 }
  0x6c   :  { %1517 = dma.done.wait [#allocation7], 384  }
  0x6d   :  { %1518 = vsyncadd [#allocation7], 4294966912 }
  0x6e   :  { %1519 = dma.done.wait [#allocation10], 32  }
  0x6f   :  { %1520 = vsyncadd [#allocation10], 4294967264  ;;  %v1532_v0 = vmov 0.0|0.0   ;;  %vm1533_vm0 = vmmov 0   ;;  %v1534_v1 = vmov 0.0   ;;  %v129_v2 = vld [vmem:[#allocation6] sm:$0xff] }
  0x70   :  { %1231 = vmatprep.subr.bf16.mxu0 %v1532_v0  ;;  %1177 = vmatprep.mubr.msk.f32.mxu0 %vm1533_vm0, %v1534_v1  ;;  %v130_v3 = vld [vmem:[#allocation6 + $0x8] sm:$0xff]  ;;  %s2138_s21 = sld [smem:[#allocation20_spill]]  ;;  %v141_v6 = vand.u32 2147483647, %v129_v2  ;;  %v126_v13 = vld [vmem:[#allocation2] sm:$0xff]  ;;  %vm196_vm1 = vcmask 130048   ;;  %vm137_vm4 = vcmp.ne.f32.partialorder %v129_v2, %v129_v2 }
  0x71   :  { %1234 = vmatprep.subr.bf16.mxu1 %v1532_v0  ;;  %1184 = vmatprep.mubr.msk.f32.mxu1 %vm1533_vm0, %v1534_v1  ;;  %v142_v7 = vand.u32 2147483647, %v130_v3  ;;  %v135_v26 = vmax.f32 %v129_v2, 0.0  ;;  %v136_v29 = vmax.f32 %v130_v3, 0.0  ;;  %vm138_vm5 = vcmp.ne.f32.partialorder %v130_v3, %v130_v3  ;;  %v417_v44 = vld [vmem:[%s2112_s8] sm:$0xff]  ;;  %v418_v45 = vld [vmem:[%s2112_s8 + $0x8] sm:$0xff] }
  0x72   :  { %v143_v9 = vsub.f32 0.0, %v141_v6  ;;  %v195_v43 = vmul.f32 %v126_v13, %v126_v13  ;;  %v437_v46 = vand.u32 2147483647, %v417_v44  ;;  %v438_v47 = vand.u32 2147483647, %v418_v45  ;;  %v1751_v50 = vld [vmem:[%s2112_s8 + $0x10] sm:$0xff] }
  0x73   :  { %v144_v10 = vsub.f32 0.0, %v142_v7  ;;  %v1756_v51 = vld [vmem:[%s2112_s8 + $0x18] sm:$0xff]  ;;  %v439_v54 = vand.u32 2147483647, %v1751_v50  ;;  %vm429_vm8 = vcmp.ne.f32.partialorder %v417_v44, %v417_v44  ;;  %vm430_vm9 = vcmp.ne.f32.partialorder %v418_v45, %v418_v45  ;;  %s2141_s2 = sld [smem:[#allocation23_spill]]  ;;  %s2142_s19 = sld [smem:[#allocation22_spill]] }
  0x74   :  { %v145_v11 = vmul.f32 1.442695, %v143_v9  ;;  %v441_v48 = vsub.f32 0.0, %v437_v46  ;;  %v442_v49 = vsub.f32 0.0, %v438_v47  ;;  %v440_v55 = vand.u32 2147483647, %v1756_v51 }
  0x75   :  { %v147_v12 = vmul.f32 1.442695, %v144_v10  ;;  %v443_v56 = vsub.f32 0.0, %v439_v54  ;;  %v427_v46 = vmax.f32 %v1751_v50, 0.0  ;;  %vm431_vm11 = vcmp.ne.f32.partialorder %v1751_v50, %v1751_v50  ;;  %s1483_s5 = scalar_lea.hbm %s2124_s20, 16 }
  0x76   :  { %v1711_v4 = vld [vmem:[%s2138_s21] sm:$0xff]  ;;  %v1716_v5 = vld [vmem:[%s2138_s21 + $0x8] sm:$0xff]  ;;  %1285 = vpow2.f32 %v145_v11  ;;  %v445_v52 = vmul.f32 1.442695, %v441_v48  ;;  %v447_v53 = vmul.f32 1.442695, %v442_v49  ;;  %vm432_vm13 = vcmp.ne.f32.partialorder %v1756_v51, %v1756_v51  ;;  %p1484_p12 = scmp.ne.s32.totalorder %s2124_s20, %s1483_s5  ;;  %p1487_p13 = scmp.lt.u32.totalorder %s1483_s5, %s2124_s20 }
  0x77   :  { %v1235_v8 = vpack.c.bf16 %v1716_v5, %v1711_v4  ;;  %1287 = vpow2.f32 %v147_v12  ;;  %v444_v57 = vsub.f32 0.0, %v440_v55  ;;  %v449_v58 = vmul.f32 1.442695, %v443_v56 }
  0x78   :  { %v428_v55 = vmax.f32 %v1756_v51, 0.0  ;;  %p1489_p0 = pnand %p1487_p13, %p1484_p12 }
  0x79   :  { %1236 = vmatpush3.bf16.msra.mxu1 %v1235_v8  ;;  %v451_v59 = vmul.f32 1.442695, %v444_v57 }
  0x7a   :  { %1243 = vmatprep.subr.bf16.mxu1 %v1532_v0 }
  0x7c   :  { %1185 = vmatmul.mubr.msk.f32.vlgmr.msra.gmra.mrb[0].mxu1 %vm196_vm1, %v126_v13 }
  0x7d   :  { %1206 = vmatprep.mubr.msk.f32.mxu1 %vm1533_vm0, %v1534_v1 }
  0x80   :  { %v1286_v14 = vpop.eup %1285 }
  0x81   :  { %v1288_v15 = vpop.eup %1287  ;;  %v149_v16 = vadd.f32 1.0, %v1286_v14  ;;  %v152_v18 = vmul.f32 -0.5, %v1286_v14  ;;  %v155_v21 = vand.u32 2147483647, %v1286_v14 }
  0x82   :  { %v158_v17 = vadd.f32 1.0, %v1288_v15  ;;  %v161_v19 = vmul.f32 -0.5, %v1288_v15  ;;  %v164_v23 = vand.u32 2147483647, %v1288_v15 }
  0x83   :  { %1289 = vlog2.f32 %v149_v16  ;;  %v153_v20 = vadd.f32 1.0, %v152_v18  ;;  %vm156_vm2 = vcmp.lt.f32.partialorder %v155_v21, 0.0004427343  ;;  %v425_v18 = vmax.f32 %v417_v44, 0.0 }
  0x84   :  { %1291 = vlog2.f32 %v158_v17  ;;  %v162_v22 = vadd.f32 1.0, %v161_v19  ;;  %vm165_vm3 = vcmp.lt.f32.partialorder %v164_v23, 0.0004427343  ;;  %v426_v19 = vmax.f32 %v418_v45, 0.0 }
  0x85   :  { %v154_v24 = vmul.f32 %v1286_v14, %v153_v20  ;;  %1293 = vpow2.f32 %v445_v52 }
  0x86   :  { %v163_v27 = vmul.f32 %v1288_v15, %v162_v22  ;;  %1295 = vpow2.f32 %v447_v53 }
  0x87   :  { %1297 = vpow2.f32 %v449_v58 }
  0x88   :  { %1299 = vpow2.f32 %v451_v59 }
  0x8d   :  { %v1290_v25 = vpop.eup %1289 }
  0x8e   :  { %v1292_v28 = vpop.eup %1291  ;;  %v151_v30 = vmul.f32 0.6931472, %v1290_v25 }
  0x8f   :  { %v160_v31 = vmul.f32 0.6931472, %v1292_v28  ;;  %v1294_v60 = vpop.eup %1293 }
  0x90   :  { %v157_v32 = vsel %vm156_vm2, %v154_v24, %v151_v30  ;;  %v1296_v61 = vpop.eup %1295  ;;  %v453_v62 = vadd.f32 1.0, %v1294_v60  ;;  %v456_v8 = vmul.f32 -0.5, %v1294_v60  ;;  %v459_v13 = vand.u32 2147483647, %v1294_v60 }
  0x91   :  { %v166_v33 = vsel %vm165_vm3, %v163_v27, %v160_v31  ;;  %v167_v34 = vadd.f32 %v157_v32, %v135_v26  ;;  %v462_v63 = vadd.f32 1.0, %v1296_v61  ;;  %v465_v9 = vmul.f32 -0.5, %v1296_v61  ;;  %v1763_v32 = vld [vmem:[%s2111_s7] sm:$0xff] }
  0x92   :  { %v168_v35 = vadd.f32 %v166_v33, %v136_v29  ;;  %1301 = vlog2.f32 %v453_v62  ;;  %v457_v10 = vadd.f32 1.0, %v456_v8  ;;  %v468_v14 = vand.u32 2147483647, %v1296_v61  ;;  %v1768_v33 = vld [vmem:[%s2111_s7 + $0x8] sm:$0xff] }
  0x93   :  { %v169_v36 = vsel %vm137_vm4, %v129_v2, %v167_v34  ;;  %v1298_v2 = vpop.eup %1297  ;;  %1303 = vlog2.f32 %v462_v63  ;;  %v466_v11 = vadd.f32 1.0, %v465_v9  ;;  %vm460_vm6 = vcmp.lt.f32.partialorder %v459_v13, 0.0004427343 }
  0x94   :  { %v170_v37 = vsel %vm138_vm5, %v130_v3, %v168_v35  ;;  %v1724_v38 = vadd.f32 1e-06, %v169_v36  ;;  %v1300_v3 = vpop.eup %1299  ;;  %v471_v6 = vadd.f32 1.0, %v1298_v2  ;;  %v458_v17 = vmul.f32 %v1294_v60, %v457_v10  ;;  %v1773_v35 = vld [vmem:[%s2111_s7 + $0x10] sm:$0xff] }
  0x95   :  { %v1726_v39 = vadd.f32 1e-06, %v170_v37  ;;  %v480_v7 = vadd.f32 1.0, %v1300_v3  ;;  %v467_v22 = vmul.f32 %v1296_v61, %v466_v11  ;;  %vm469_vm7 = vcmp.lt.f32.partialorder %v468_v14, 0.0004427343 }
  0x96   :  { %v1730_v40 = vmul.f32 %v1724_v38, %v1724_v38  ;;  %1305 = vlog2.f32 %v471_v6  ;;  %v474_v28 = vmul.f32 -0.5, %v1298_v2  ;;  %v477_v29 = vand.u32 2147483647, %v1298_v2 }
  0x97   :  { %v1734_v41 = vmul.f32 %v1726_v39, %v1726_v39  ;;  %1307 = vlog2.f32 %v480_v7  ;;  %v483_v30 = vmul.f32 -0.5, %v1300_v3  ;;  %v1244_v36 = vpack.c.bf16 %v1768_v33, %v1763_v32 }
  0x98   :  { %v475_v47 = vadd.f32 1.0, %v474_v28  ;;  %vm1793_vm10 = vcmp.lt.f32.partialorder %v477_v29, 0.0004427343  ;;  %v486_v57 = vand.u32 2147483647, %v1300_v3  ;;  %vm377_vm3 = vcmask 261120  }
  0x99   :  { %v1232_v42 = vpack.c.bf16 %v1734_v41, %v1730_v40  ;;  %1245 = vmatpush3.bf16.msra.mxu1 %v1244_v36  ;;  %v484_v53 = vadd.f32 1.0, %v483_v30  ;;  %v354_v30 = vlaneseq }
  0x9a   :  { %1246 = vmatprep.subr.bf16.mxu1 %v1532_v0  ;;  %v476_v56 = vmul.f32 %v1298_v2, %v475_v47  ;;  %vm487_vm12 = vcmp.lt.f32.partialorder %v486_v57, 0.0004427343 }
  0x9b   :  { %1233 = vmatpush3.bf16.msra.mxu0 %v1232_v42  ;;  %v1782_v42 = vld [vmem:[%s2111_s7 + $0x18] sm:$0xff]  ;;  %v485_v58 = vmul.f32 %v1300_v3, %v484_v53  ;;  %v355_v36 = vshrl.u32 %v354_v30, 7 }
  0x9c   :  { %1237 = vmatprep.subr.bf16.mxu0 %v1532_v0  ;;  %v1302_v12 = vpop.eup %1301 }
  0x9d   :  { %v1304_v15 = vpop.eup %1303  ;;  %v455_v16 = vmul.f32 0.6931472, %v1302_v12  ;;  %v1842_v49 = vsub.s32 0, %v355_v36 }
  0x9e   :  { %1178 = vmatmul.mubr.msk.f32.vlgmr.msra.gmra.mrb[0].mxu0 %vm196_vm1, %v195_v43  ;;  %v464_v20 = vmul.f32 0.6931472, %v1304_v15 }
  0x9f   :  { %1195 = vmatprep.mubr.msk.f32.mxu0 %vm1533_vm0, %v1534_v1  ;;  %v461_v21 = vsel %vm460_vm6, %v458_v17, %v455_v16 }
  0xa0   :  { %v489_v23 = vadd.f32 %v461_v21, %v425_v18  ;;  %v470_v24 = vsel %vm469_vm7, %v467_v22, %v464_v20  ;;  %v1306_v25 = vpop.eup %1305 }
  0xa1   :  { %v490_v26 = vadd.f32 %v470_v24, %v426_v19  ;;  %v1308_v31 = vpop.eup %1307  ;;  %v473_v43 = vmul.f32 0.6931472, %v1306_v25 }
  0xa2   :  { %v493_v27 = vsel %vm429_vm8, %v417_v44, %v489_v23  ;;  %v482_v52 = vmul.f32 0.6931472, %v1308_v31  ;;  %v134_v31 = vld [vmem:[#allocation9] sm:$0x1] }
  0xa3   :  { %v494_v34 = vsel %vm430_vm9, %v418_v45, %v490_v26  ;;  %v1777_v37 = vadd.f32 1e-06, %v493_v27  ;;  %v1247_v45 = vpack.c.bf16 %v1782_v42, %v1773_v35  ;;  %v479_v60 = vsel %vm1793_vm10, %v476_v56, %v473_v43  ;;  %v1839_v43 = vld [vmem:[%s2142_s19] sm:$0x1] }
  0xa4   :  { %v1784_v44 = vadd.f32 1e-06, %v494_v34  ;;  %v488_v61 = vsel %vm487_vm12, %v485_v58, %v482_v52  ;;  %v491_v62 = vadd.f32 %v479_v60, %v427_v46  ;;  %v133_v52 = vld [vmem:[#allocation8] sm:$0xff] }
  0xa5   :  { %v1791_v48 = vmul.f32 %v1777_v37, %v1777_v37  ;;  %1248 = vmatpush3.bf16.msra.mxu1 %v1247_v45  ;;  %v492_v63 = vadd.f32 %v488_v61, %v428_v55 }
  0xa6   :  { %v1799_v54 = vmul.f32 %v1784_v44, %v1784_v44  ;;  %1255 = vmatprep.subr.bf16.mxu1 %v1532_v0  ;;  %v495_v2 = vsel %vm431_vm11, %v1751_v50, %v491_v62  ;;  %v132_v50 = vld [vmem:[%s2141_s2] sm:$0x1] }
  0xa7   :  { %v496_v3 = vsel %vm432_vm13, %v1756_v51, %v492_v63  ;;  %v1815_v6 = vadd.f32 1e-06, %v495_v2  ;;  %v176_v51 = vand.u32 2147483647, %v132_v50  ;;  %v173_v23 = vmax.f32 %v132_v50, 0.0 }
  0xa8   :  { %v1238_v59 = vpack.c.bf16 %v1799_v54, %v1791_v48  ;;  %v1817_v7 = vadd.f32 1e-06, %v496_v3  ;;  %vm174_vm15 = vcmp.ne.f32.partialorder %v132_v50, %v132_v50  ;;  %v1854_v63 = vld [vmem:[%s2114_s10] sm:$0x1]  ;;  %vm399_vm13 = vcmask 253952  }
  0xa9   :  { %v1821_v8 = vmul.f32 %v1815_v6, %v1815_v6  ;;  %v177_v11 = vsub.f32 0.0, %v176_v51  ;;  %v504_v2 = vand.u32 2147483647, %v1854_v63  ;;  %v1865_v51 = vld [vmem:[%s2118_s14 + $0x8] sm:$0xff]  ;;  %vm502_vm4 = vcmp.ne.f32.partialorder %v1854_v63, %v1854_v63 }
  0xaa   :  { %1239 = vmatpush3.bf16.msra.mxu0 %v1238_v59  ;;  %v1825_v9 = vmul.f32 %v1817_v7, %v1817_v7  ;;  %vm777_vm8 = vcmp.ne.f32.partialorder %v1865_v51, %v1865_v51 }
  0xab   :  { %1240 = vmatprep.subr.bf16.mxu0 %v1532_v0  ;;  %v178_v12 = vmul.f32 1.442695, %v177_v11  ;;  %v505_v3 = vsub.f32 0.0, %v504_v2  ;;  %v785_v11 = vand.u32 2147483647, %v1865_v51 }
  0xac   :  { %v1241_v10 = vpack.c.bf16 %v1825_v9, %v1821_v8 }
  0xad   :  { %1309 = vpow2.f32 %v178_v12  ;;  %v1872_v12 = vld [vmem:[%s2118_s14 + $0x10] sm:$0xff] }
  0xae   :  { %1242 = vmatpush3.bf16.msra.mxu0 %v1241_v10  ;;  %v506_v10 = vmul.f32 1.442695, %v505_v3  ;;  %vm778_vm10 = vcmp.ne.f32.partialorder %v1872_v12, %v1872_v12 }
  0xaf   :  { %1249 = vmatprep.subr.bf16.mxu0 %v1532_v0 }
  0xb7   :  { %v1310_v15 = vpop.eup %1309 }
  0xb8   :  { %v180_v16 = vadd.f32 1.0, %v1310_v15  ;;  %v183_v17 = vmul.f32 -0.5, %v1310_v15  ;;  %v186_v20 = vand.u32 2147483647, %v1310_v15 }
  0xba   :  { %1311 = vlog2.f32 %v180_v16  ;;  %v184_v18 = vadd.f32 1.0, %v183_v17  ;;  %vm187_vm14 = vcmp.lt.f32.partialorder %v186_v20, 0.0004427343  ;;  %v1878_v16 = vld [vmem:[%s2118_s14 + $0x18] sm:$0xff] }
  0xbb   :  { %vm779_vm12 = vcmp.ne.f32.partialorder %v1878_v16, %v1878_v16 }
  0xbc   :  { %v185_v22 = vmul.f32 %v1310_v15, %v184_v18  ;;  %v786_v15 = vand.u32 2147483647, %v1872_v12 }
  0xc4   :  { %v1312_v19 = vpop.eup %1311 }
  0xc5   :  { %v182_v21 = vmul.f32 0.6931472, %v1312_v19  ;;  %v787_v19 = vand.u32 2147483647, %v1878_v16 }
  0xc7   :  { %v188_v24 = vsel %vm187_vm14, %v185_v22, %v182_v21  ;;  %v790_v21 = vsub.f32 0.0, %v786_v15  ;;  %v791_v22 = vsub.f32 0.0, %v787_v19 }
  0xc8   :  { %v189_v25 = vadd.f32 %v188_v24, %v173_v23  ;;  %v1884_v24 = vld [vmem:[%s2120_s16] sm:$0x1] }
  0xc9   :  { %v796_v23 = vmul.f32 1.442695, %v790_v21 }
  0xca   :  { %v190_v28 = vsel %vm174_vm15, %v132_v50, %v189_v25  ;;  %v1860_v50 = vld [vmem:[%s2118_s14] sm:$0xff]  ;;  %vm1068_vm15 = vcmask 64512  }
  0xcb   :  { %v1833_v29 = vadd.f32 1e-06, %v190_v28  ;;  %vm776_vm7 = vcmp.ne.f32.partialorder %v1860_v50, %v1860_v50 }
  0xcd   :  { %v351_v34 = vmul.f32 %v1833_v29, %v134_v31 }
  0xcf   :  { %v352_v47 = vadd.f32 %v351_v34, %v1839_v43 }
  0xd1   :  { %v357_v58 = vrot.slane %v352_v47, %v1842_v49 }
 0x14f   :  { %v347_v13 = vpop.f32.mrb[0].mxu1 }
 0x150   :  { %v1186_v14 = vpop.f32.mrb[1].mxu1 }
 0x151   :  { %v789_v14 = vsub.f32 0.0, %v785_v11  ;;  %v501_v11 = vmax.f32 %v1854_v63, 0.0 }
 0x153   :  { %v794_v18 = vmul.f32 1.442695, %v789_v14 }
 0x171   :  { %v266_v26 = vpop.f32.mrb[0].mxu0 }
 0x172   :  { %1313 = vrsqrt.f32 %v266_v26  ;;  %v1179_v27 = vpop.f32.mrb[1].mxu0  ;;  %vm272_vm1 = vcmp.eq.f32.partialorder %v266_v26, inf  ;;  %v275_v53 = vand.u32 2147483648, %v266_v26  ;;  %vm274_vm2 = vcmp.eq.f32.partialorder %v266_v26, 0.0 }
 0x173   :  { %v851_v27 = vand.u32 2147483647, %v1884_v24 }
 0x175   :  { %v852_v28 = vsub.f32 0.0, %v851_v27 }
 0x177   :  { %v853_v30 = vmul.f32 1.442695, %v852_v28 }
 0x17c   :  { %v1314_v45 = vpop.eup %1313 }
 0x17d   :  { %v271_v46 = vmul.f32 %v1314_v45, %v266_v26 }
 0x17f   :  { %v273_v55 = vsel %vm272_vm1, %v266_v26, %v271_v46  ;;  %v798_v26 = vmul.f32 1.442695, %v791_v22  ;;  %vm849_vm1 = vcmp.ne.f32.partialorder %v1884_v24, %v1884_v24 }
 0x180   :  { %v276_v56 = vsel %vm274_vm2, %v275_v53, %v273_v55  ;;  %vm1094_vm2 = vcmask 57344  }
 0x181   :  { %v277_v57 = vmul.f32 %v276_v56, %v133_v52 }
 0x183   :  { %v348_v59 = vadd.f32 %v347_v13, %v277_v57 }
 0x185   :  { %v359_v60 = vadd.f32 %v357_v58, %v348_v59 }
 0x187   :  { %1315 = vtanh.f32 %v359_v60 }
 0x188   :  { %1317 = vpow2.f32 %v506_v10  ;;  %v1900_v10 = vmul.f32 %v1711_v4, %v1711_v4 }
 0x191   :  { %v1316_v61 = vpop.eup %1315 }
 0x192   :  { %1207 = vmatmul.mubr.msk.f32.vlgmr.msra.gmra.mrb[2].mxu1 %vm377_vm3, %v1316_v61  ;;  %v525_v62 = vmul.f32 %v1316_v61, %v1316_v61  ;;  %v1318_v20 = vpop.eup %1317 }
 0x193   :  { %1228 = vmatprep.mubr.msk.f32.mxu1 %vm1533_vm0, %v1534_v1  ;;  %v508_v25 = vadd.f32 1.0, %v1318_v20  ;;  %v511_v36 = vmul.f32 -0.5, %v1318_v20  ;;  %v514_v58 = vand.u32 2147483647, %v1318_v20 }
 0x194   :  { %1196 = vmatmul.mubr.msk.f32.vlgmr.msra.gmra.mrb[2].mxu0 %vm377_vm3, %v525_v62 }
 0x195   :  { %1217 = vmatprep.mubr.msk.f32.mxu0 %vm1533_vm0, %v1534_v1  ;;  %v784_v1 = vand.u32 2147483647, %v1860_v50  ;;  %v512_v55 = vadd.f32 1.0, %v511_v36  ;;  %vm1893_vm0 = vcmp.lt.f32.partialorder %v514_v58, 0.0004427343 }
 0x197   :  { %v788_v13 = vsub.f32 0.0, %v784_v1  ;;  %v513_v60 = vmul.f32 %v1318_v20, %v512_v55  ;;  %v1904_v1 = vmul.f32 %v1716_v5, %v1716_v5 }
 0x199   :  { %v792_v17 = vmul.f32 1.442695, %v788_v13 }
 0x19b   :  { %1319 = vpow2.f32 %v792_v17 }
 0x19c   :  { %1321 = vpow2.f32 %v794_v18 }
 0x19d   :  { %1323 = vpow2.f32 %v796_v23  ;;  %v772_v23 = vmax.f32 %v1860_v50, 0.0 }
 0x19e   :  { %1325 = vpow2.f32 %v798_v26 }
 0x19f   :  { %1327 = vlog2.f32 %v508_v25  ;;  %v773_v25 = vmax.f32 %v1865_v51, 0.0 }
 0x1a0   :  { %1329 = vpow2.f32 %v853_v30 }
 0x1a5   :  { %v1320_v31 = vpop.eup %1319 }
 0x1a6   :  { %v1322_v34 = vpop.eup %1321  ;;  %v800_v45 = vadd.f32 1.0, %v1320_v31  ;;  %v803_v2 = vmul.f32 -0.5, %v1320_v31  ;;  %v806_v17 = vand.u32 2147483647, %v1320_v31 }
 0x1a7   :  { %v809_v46 = vadd.f32 1.0, %v1322_v34  ;;  %v1324_v47 = vpop.eup %1323  ;;  %v812_v3 = vmul.f32 -0.5, %v1322_v34  ;;  %v815_v18 = vand.u32 2147483647, %v1322_v34 }
 0x1a8   :  { %1331 = vlog2.f32 %v800_v45  ;;  %v1887_v52 = vpop.eup %1325  ;;  %v818_v53 = vadd.f32 1.0, %v1324_v47  ;;  %v804_v13 = vadd.f32 1.0, %v803_v2  ;;  %v821_v14 = vmul.f32 -0.5, %v1324_v47 }
 0x1a9   :  { %1333 = vlog2.f32 %v809_v46  ;;  %v827_v56 = vadd.f32 1.0, %v1887_v52  ;;  %v1328_v57 = vpop.eup %1327  ;;  %vm807_vm5 = vcmp.lt.f32.partialorder %v806_v17, 0.0004427343  ;;  %vm816_vm6 = vcmp.lt.f32.partialorder %v815_v18, 0.0004427343  ;;  %v1949_v18 = vld [vmem:[%s2117_s13 + $0x18] sm:$0xff] }
 0x1aa   :  { %1335 = vlog2.f32 %v818_v53  ;;  %v510_v59 = vmul.f32 0.6931472, %v1328_v57  ;;  %v1890_v61 = vpop.eup %1329  ;;  %v805_v5 = vmul.f32 %v1320_v31, %v804_v13  ;;  %v822_v22 = vadd.f32 1.0, %v821_v14 }
 0x1ab   :  { %1337 = vlog2.f32 %v827_v56  ;;  %v855_v4 = vadd.f32 1.0, %v1890_v61  ;;  %v824_v36 = vand.u32 2147483647, %v1324_v47  ;;  %v774_v53 = vmax.f32 %v1872_v12, 0.0 }
 0x1ac   :  { %1339 = vlog2.f32 %v1724_v38  ;;  %v813_v38 = vadd.f32 1.0, %v812_v3  ;;  %v823_v30 = vmul.f32 %v1324_v47, %v822_v22  ;;  %v706_v57 = vmul.f32 %v1763_v32, %v1763_v32  ;;  %v760_v32 = vld [vmem:[%s2117_s13] sm:$0xff] }
 0x1ad   :  { %1341 = vlog2.f32 %v1726_v39  ;;  %v516_v39 = vsel %vm1893_vm0, %v513_v60, %v510_v59  ;;  %vm825_vm9 = vcmp.lt.f32.partialorder %v824_v36, 0.0004427343  ;;  %v830_v2 = vmul.f32 -0.5, %v1887_v52 }
 0x1ae   :  { %v814_v21 = vmul.f32 %v1322_v34, %v813_v38  ;;  %v517_v56 = vadd.f32 %v516_v39, %v501_v11  ;;  %1343 = vlog2.f32 %v855_v4  ;;  %v833_v38 = vand.u32 2147483647, %v1887_v52  ;;  %v1939_v11 = vld [vmem:[%s2117_s13 + $0x10] sm:$0xff] }
 0x1af   :  { %1345 = vlog2.f32 %v1777_v37  ;;  %v775_v4 = vmax.f32 %v1878_v16, 0.0 }
 0x1b0   :  { %vm834_vm11 = vcmp.lt.f32.partialorder %v833_v38, 0.0004427343  ;;  %v194_v38 = vmul.f32 %v1833_v29, %v1833_v29 }
 0x1b2   :  { %v1332_v15 = vpop.eup %1331 }
 0x1b3   :  { %v1334_v19 = vpop.eup %1333  ;;  %v802_v20 = vmul.f32 0.6931472, %v1332_v15  ;;  %v831_v15 = vadd.f32 1.0, %v830_v2 }
 0x1b4   :  { %v811_v26 = vmul.f32 0.6931472, %v1334_v19  ;;  %v1336_v27 = vpop.eup %1335  ;;  %v518_v19 = vsel %vm502_vm4, %v1854_v63, %v517_v56 }
 0x1b5   :  { %v808_v28 = vsel %vm807_vm5, %v805_v5, %v802_v20  ;;  %v820_v55 = vmul.f32 0.6931472, %v1336_v27  ;;  %v1338_v34 = vpop.eup %1337  ;;  %v1259_v20 = vpack.c.bf16 %v1949_v18, %v1939_v11  ;;  %v832_v5 = vmul.f32 %v1887_v52, %v831_v15 }
 0x1b6   :  { %v817_v45 = vsel %vm816_vm6, %v814_v21, %v811_v26  ;;  %v836_v46 = vadd.f32 %v808_v28, %v772_v23  ;;  %v1340_v59 = vpop.eup %1339  ;;  %v829_v37 = vmul.f32 0.6931472, %v1338_v34  ;;  %v1970_v27 = vadd.f32 1e-06, %v518_v19 }
 0x1b7   :  { %v837_v31 = vadd.f32 %v817_v45, %v773_v25  ;;  %v826_v58 = vsel %vm825_vm9, %v823_v30, %v820_v55  ;;  %v1342_v3 = vpop.eup %1341  ;;  %v362_v25 = vmul.f32 0.6931472, %v1340_v59  ;;  %v709_v34 = vmul.f32 %v1782_v42, %v1782_v42 }
 0x1b8   :  { %v840_v47 = vsel %vm776_vm7, %v1860_v50, %v836_v46  ;;  %v838_v14 = vadd.f32 %v826_v58, %v774_v53  ;;  %v1932_v50 = vld [vmem:[%s2117_s13 + $0x8] sm:$0xff]  ;;  %v835_v63 = vsel %vm834_vm11, %v832_v5, %v829_v37  ;;  %v364_v26 = vmul.f32 0.6931472, %v1342_v3  ;;  %v1983_v36 = vpop.eup %1343 }
 0x1b9   :  { %v841_v60 = vsel %vm777_vm8, %v1865_v51, %v837_v31  ;;  %v844_v62 = vadd.f32 1e-06, %v840_v47  ;;  %v1256_v39 = vpack.c.bf16 %v1932_v50, %v760_v32  ;;  %v839_v52 = vadd.f32 %v835_v63, %v775_v4  ;;  %v1346_v53 = vpop.eup %1345 }
 0x1ba   :  { %v845_v13 = vadd.f32 1e-06, %v841_v60  ;;  %v842_v22 = vsel %vm778_vm10, %v1872_v12, %v838_v14  ;;  %v365_v28 = vmul.f32 2.0, %v362_v25  ;;  %v366_v30 = vmul.f32 2.0, %v364_v26 }
 0x1bb   :  { %v1934_v51 = vmul.f32 %v844_v62, %v844_v62  ;;  %1347 = vlog2.f32 %v844_v62  ;;  %1257 = vmatpush3.bf16.msra.mxu1 %v1256_v39  ;;  %v1966_v23 = vadd.f32 1e-06, %v842_v22  ;;  %v710_v46 = vadd.f32 %v706_v57, %v1791_v48 }
 0x1bc   :  { %v1944_v17 = vmul.f32 %v845_v13, %v845_v13  ;;  %1349 = vlog2.f32 %v845_v13  ;;  %1258 = vmatprep.subr.bf16.mxu1 %v1532_v0  ;;  %v367_v55 = vsub.f32 -5.6051702, %v365_v28  ;;  %v691_v56 = vmul.f32 0.6931472, %v1346_v53 }
 0x1bd   :  { %1351 = vlog2.f32 %v1784_v44  ;;  %v707_v44 = vmul.f32 %v1768_v33, %v1768_v33  ;;  %v1977_v12 = vmul.f32 %v1966_v23, %v1966_v23  ;;  %v708_v33 = vmul.f32 %v1773_v35, %v1773_v35 }
 0x1be   :  { %v1250_v21 = vpack.c.bf16 %v1944_v17, %v1934_v51  ;;  %1353 = vlog2.f32 %v1815_v6  ;;  %v843_v6 = vsel %vm779_vm12, %v1878_v16, %v839_v52  ;;  %v368_v16 = vsub.f32 -5.6051702, %v366_v30 }
 0x1bf   :  { %1355 = vlog2.f32 %v1817_v7  ;;  %1260 = vmatpush3.bf16.msra.mxu1 %v1259_v20  ;;  %v371_v7 = vadd.f32 %v1900_v10, %v1730_v40  ;;  %v1985_v45 = vadd.f32 1e-06, %v843_v6  ;;  %v1999_v47 = vmul.f32 %v760_v32, %v760_v32 }
 0x1c0   :  { %1251 = vmatpush3.bf16.msra.mxu0 %v1250_v21  ;;  %1357 = vlog2.f32 %v1833_v29  ;;  %v712_v48 = vadd.f32 %v708_v33, %v1821_v8  ;;  %v713_v57 = vadd.f32 %v709_v34, %v1825_v9  ;;  %v698_v60 = vmul.f32 2.0, %v691_v56  ;;  %v2013_v29 = vld [vmem:[#allocation11] sm:$0x1] }
 0x1c1   :  { %1252 = vmatprep.subr.bf16.mxu0 %v1532_v0  ;;  %v372_v0 = vadd.f32 %v1904_v1, %v1734_v41  ;;  %v373_v31 = vmul.f32 100.0, %v371_v7  ;;  %v1996_v40 = vmul.f32 %v1985_v45, %v1985_v45  ;;  %v711_v41 = vadd.f32 %v707_v44, %v1799_v54 }
 0x1c2   :  { %v714_v62 = vmul.f32 100.0, %v710_v46  ;;  %v1053_v3 = vmul.f32 %v1932_v50, %v1932_v50  ;;  %v702_v32 = vsub.f32 -5.6051702, %v698_v60  ;;  %v395_v37 = vmul.f32 %v1839_v43, %v1839_v43 }
 0x1c3   :  { %v374_v10 = vmul.f32 100.0, %v372_v0  ;;  %v375_v35 = vadd.f32 %v373_v31, %v367_v55  ;;  %v1253_v42 = vpack.c.bf16 %v1996_v40, %v1977_v12  ;;  %v715_v13 = vmul.f32 100.0, %v711_v41 }
 0x1c4   :  { %v716_v19 = vmul.f32 100.0, %v712_v48  ;;  %v717_v50 = vmul.f32 100.0, %v713_v57  ;;  %v718_v22 = vadd.f32 %v714_v62, %v702_v32  ;;  %v396_v63 = vadd.f32 %v395_v37, %v194_v38 }
 0x1c5   :  { %v1348_v1 = vpop.eup %1347  ;;  %v376_v59 = vadd.f32 %v374_v10, %v368_v16  ;;  %v378_v54 = vsel %vm377_vm3, %v375_v35, 0.0  ;;  %1254 = vmatpush3.bf16.msra.mxu0 %v1253_v42  ;;  %v524_v26 = vmul.f32 %v1970_v27, %v1970_v27  ;;  %1359 = vlog2.f32 %v1970_v27 }
 0x1c6   :  { %v1350_v58 = vpop.eup %1349  ;;  %v722_v6 = vsel %vm377_vm3, %v718_v22, 0.0  ;;  %v743_v28 = vmul.f32 %v2013_v29, %v2013_v29  ;;  %v397_v0 = vmul.f32 100.0, %v396_v63  ;;  %v1037_v33 = vmul.f32 0.6931472, %v1348_v1 }
 0x1c7   :  { %v1352_v2 = vpop.eup %1351  ;;  %v379_v9 = vsel %vm377_vm3, %v376_v59, 0.0  ;;  %v1039_v55 = vmul.f32 0.6931472, %v1350_v58  ;;  %1361 = vlog2.f32 %v1966_v23  ;;  %v1054_v35 = vmul.f32 %v1939_v11, %v1939_v11 }
 0x1c8   :  { %v1354_v8 = vpop.eup %1353  ;;  %v693_v14 = vmul.f32 0.6931472, %v1352_v2  ;;  %v380_v39 = vadd.f32 %v379_v9, %v378_v54  ;;  %1363 = vlog2.f32 %v1985_v45  ;;  %v1044_v56 = vmul.f32 2.0, %v1037_v33 }
 0x1c9   :  { %v1356_v15 = vpop.eup %1355  ;;  %v695_v4 = vmul.f32 0.6931472, %v1354_v8  ;;  %v1045_v41 = vmul.f32 2.0, %v1039_v55  ;;  %v744_v23 = vadd.f32 %v743_v28, %v524_v26  ;;  %v1056_v59 = vadd.f32 %v1999_v47, %v1934_v51  ;;  %v771_v28 = vld [vmem:[%s2122_s18] sm:$0x1] }
 0x1ca   :  { %v1358_v20 = vpop.eup %1357  ;;  %v697_v5 = vmul.f32 0.6931472, %v1356_v15  ;;  %v699_v21 = vmul.f32 2.0, %v693_v14  ;;  %381 = vadd.xlane.f32.xlu0 %v380_v39  ;;  %v1048_v42 = vsub.f32 -5.6051702, %v1044_v56  ;;  %v1057_v2 = vadd.f32 %v1053_v3, %v1944_v17 }
 0x1cb   :  { %v700_v52 = vmul.f32 2.0, %v695_v4  ;;  %v392_v25 = vmul.f32 0.6931472, %v1358_v20  ;;  %v1049_v62 = vsub.f32 -5.6051702, %v1045_v41  ;;  %v1055_v11 = vmul.f32 %v1949_v18, %v1949_v18 }
 0x1cc   :  { %v701_v43 = vmul.f32 2.0, %v697_v5  ;;  %v703_v44 = vsub.f32 -5.6051702, %v699_v21  ;;  %v1060_v54 = vmul.f32 100.0, %v1056_v59  ;;  %v1061_v9 = vmul.f32 100.0, %v1057_v2 }
 0x1cd   :  { %v704_v30 = vsub.f32 -5.6051702, %v700_v52  ;;  %v393_v7 = vmul.f32 2.0, %v392_v25  ;;  %v848_v14 = vmax.f32 %v1884_v24, 0.0  ;;  %v861_v51 = vand.u32 2147483647, %v1890_v61 }
 0x1ce   :  { %v705_v46 = vsub.f32 -5.6051702, %v701_v43  ;;  %v719_v53 = vadd.f32 %v715_v13, %v703_v44  ;;  %v858_v13 = vmul.f32 -0.5, %v1890_v61  ;;  %v1058_v32 = vadd.f32 %v1054_v35, %v1977_v12 }
 0x1cf   :  { %v720_v16 = vadd.f32 %v716_v19, %v704_v30  ;;  %v394_v31 = vsub.f32 -5.6051702, %v393_v7  ;;  %v1360_v38 = vpop.eup %1359  ;;  %v857_v37 = vmul.f32 0.6931472, %v1983_v36  ;;  %v745_v3 = vmul.f32 100.0, %v744_v23 }
 0x1d0   :  { %v721_v34 = vadd.f32 %v717_v50, %v705_v46  ;;  %v723_v10 = vsel %vm377_vm3, %v719_v53, 0.0  ;;  %v740_v47 = vmul.f32 0.6931472, %v1360_v38  ;;  %v859_v17 = vadd.f32 1.0, %v858_v13  ;;  %v424_v13 = vld [vmem:[%s2116_s12] sm:$0x1] }
 0x1d1   :  { %v724_v48 = vadd.f32 %v723_v10, %v722_v6  ;;  %v725_v1 = vsel %vm377_vm3, %v720_v16, 0.0  ;;  %v398_v57 = vadd.f32 %v397_v0, %v394_v31  ;;  %v1064_v15 = vadd.f32 %v1060_v54, %v1048_v42  ;;  %v1362_v4 = vpop.eup %1361 }
 0x1d2   :  { %v727_v58 = vsel %vm377_vm3, %v721_v34, 0.0  ;;  %v1065_v18 = vadd.f32 %v1061_v9, %v1049_v62  ;;  %vm2039_vm14 = vcmp.lt.f32.partialorder %v861_v51, 0.0004427343  ;;  %v741_v19 = vmul.f32 2.0, %v740_v47  ;;  %v1364_v5 = vpop.eup %1363  ;;  %v768_v34 = vld [vmem:[%s2119_s15] sm:$0x1] }
 0x1d3   :  { %v726_v45 = vadd.f32 %v725_v1, %v724_v48  ;;  %v400_v60 = vsel %vm399_vm13, %v398_v57, 0.0  ;;  %v1059_v50 = vadd.f32 %v1055_v11, %v1996_v40  ;;  %v860_v20 = vmul.f32 %v1890_v61, %v859_v17  ;;  %v423_v51 = vld [vmem:[%s2115_s11] sm:$0xff] }
 0x1d4   :  { %401 = vadd.xlane.f32.xlu0 %v400_v60  ;;  %v1041_v12 = vmul.f32 0.6931472, %v1362_v4  ;;  %v742_v36 = vsub.f32 -5.6051702, %v741_v19  ;;  %v1043_v21 = vmul.f32 0.6931472, %v1364_v5  ;;  %v1090_v48 = vmul.f32 %v768_v34, %v768_v34 }
 0x1d5   :  { %v728_v8 = vadd.f32 %v727_v58, %v726_v45  ;;  %v1062_v22 = vmul.f32 100.0, %v1058_v32  ;;  %v863_v63 = vsel %vm2039_vm14, %v860_v20, %v857_v37  ;;  %v1069_v25 = vsel %vm1068_vm15, %v1064_v15, 0.0 }
 0x1d6   :  { %v1046_v52 = vmul.f32 2.0, %v1041_v12  ;;  %v1070_v26 = vsel %vm1068_vm15, %v1065_v18, 0.0  ;;  %v864_v40 = vadd.f32 %v863_v63, %v848_v14  ;;  %v746_v43 = vadd.f32 %v745_v3, %v742_v36 }
 0x1d7   :  { %729 = vadd.xlane.f32.xlu1 %v728_v8  ;;  %v1047_v44 = vmul.f32 2.0, %v1043_v21  ;;  %v1063_v61 = vmul.f32 100.0, %v1059_v50  ;;  %v1071_v33 = vadd.f32 %v1070_v26, %v1069_v25  ;;  %v680_v38 = vmul.f32 %v1970_v27, %v424_v13 }
 0x1d8   :  { %v1050_v6 = vsub.f32 -5.6051702, %v1046_v52  ;;  %v865_v30 = vsel %vm849_vm1, %v1884_v24, %v864_v40  ;;  %v747_v7 = vsel %vm399_vm13, %v746_v43, 0.0 }
 0x1d9   :  { %v1051_v0 = vsub.f32 -5.6051702, %v1047_v44  ;;  %v866_v46 = vadd.f32 1e-06, %v865_v30  ;;  %v681_v9 = vadd.f32 %v680_v38, %v2013_v29 }
 0x1da   :  { %v1066_v53 = vadd.f32 %v1062_v22, %v1050_v6 }
 0x1db   :  { %748 = vadd.xlane.f32.xlu1 %v747_v7  ;;  %v1067_v55 = vadd.f32 %v1063_v61, %v1051_v0  ;;  %v1027_v16 = vmul.f32 %v866_v46, %v771_v28  ;;  %1365 = vlog2.f32 %v866_v46  ;;  %v871_v35 = vmul.f32 %v866_v46, %v866_v46 }
 0x1dc   :  { %v1072_v31 = vsel %vm1068_vm15, %v1066_v53, 0.0  ;;  %v686_v17 = vrot.slane %v681_v9, %v1842_v49 }
 0x1dd   :  { %v1073_v10 = vadd.f32 %v1072_v31, %v1071_v33  ;;  %v1074_v56 = vsel %vm1068_vm15, %v1067_v55, 0.0  ;;  %v2061_v24 = vadd.f32 %v1027_v16, %v768_v34  ;;  %v1091_v1 = vadd.f32 %v1090_v48, %v871_v35 }
 0x1df   :  { %v1075_v41 = vadd.f32 %v1074_v56, %v1073_v10  ;;  %v1092_v42 = vmul.f32 100.0, %v1091_v1 }
 0x1e1   :  { %1076 = vadd.xlane.f32.xlu0 %v1075_v41 }
 0x1e5   :  { %v1366_v57 = vpop.eup %1365 }
 0x1e6   :  { %v1087_v58 = vmul.f32 0.6931472, %v1366_v57 }
 0x1e8   :  { %v1088_v23 = vmul.f32 2.0, %v1087_v58 }
 0x1ea   :  { %v1089_v59 = vsub.f32 -5.6051702, %v1088_v23 }
 0x1ec   :  { %v1093_v45 = vadd.f32 %v1092_v42, %v1089_v59 }
 0x1ee   :  { %v1095_v60 = vsel %vm1094_vm2, %v1093_v45, 0.0 }
 0x1ef   :  { %1096 = vadd.xlane.f32.xlu1 %v1095_v60 }
 0x257   :  { %v382_v39 = vpop.xlane.xlu0 %381 }
 0x258   :  { %v383_v4 = vrot.slane %v382_v39, 4 }
 0x25a   :  { %v384_v19 = vadd.f32 %v383_v4, %v382_v39 }
 0x25c   :  { %v385_v50 = vrot.slane %v384_v19, 2 }
 0x25e   :  { %v386_v20 = vadd.f32 %v385_v50, %v384_v19 }
 0x260   :  { %v387_v12 = vrot.slane %v386_v20, 1 }
 0x261   :  { %v402_v5 = vpop.xlane.xlu0 %401 }
 0x262   :  { %v403_v36 = vrot.slane %v402_v5, 4  ;;  %v388_v21 = vadd.f32 %v387_v12, %v386_v20 }
 0x264   :  { %v730_v22 = vpop.xlane.xlu1 %729  ;;  %v404_v63 = vadd.f32 %v403_v36, %v402_v5  ;;  %1261 = vpush %v388_v21 }
 0x265   :  { %v676_v62 = vpop.f32.mrb[2].mxu1  ;;  %v731_v52 = vrot.slane %v730_v22, 4 }
 0x266   :  { %v1208_v2 = vpop.f32.mrb[3].mxu1  ;;  %v405_v25 = vrot.slane %v404_v63, 2 }
 0x267   :  { %v595_v11 = vpop.f32.mrb[2].mxu0  ;;  %v732_v26 = vadd.f32 %v731_v52, %v730_v22 }
 0x268   :  { %1367 = vrsqrt.f32 %v595_v11  ;;  %v1197_v54 = vpop.f32.mrb[3].mxu0  ;;  %vm601_vm0 = vcmp.eq.f32.partialorder %v595_v11, inf  ;;  %v604_v47 = vand.u32 2147483648, %v595_v11  ;;  %vm603_vm4 = vcmp.eq.f32.partialorder %v595_v11, 0.0  ;;  %v749_v6 = vpop.xlane.xlu1 %748 }
 0x269   :  { %v406_v40 = vadd.f32 %v405_v25, %v404_v63  ;;  %v733_v43 = vrot.slane %v732_v26, 2  ;;  %v750_v30 = vrot.slane %v749_v6, 4 }
 0x26b   :  { %v407_v44 = vrot.slane %v406_v40, 1  ;;  %v734_v61 = vadd.f32 %v733_v43, %v732_v26  ;;  %v751_v0 = vadd.f32 %v750_v30, %v749_v6 }
 0x26d   :  { %v408_v28 = vadd.f32 %v407_v44, %v406_v40  ;;  %v735_v7 = vrot.slane %v734_v61, 1  ;;  %v752_v46 = vrot.slane %v751_v0, 2 }
 0x26e   :  { %v1077_v53 = vpop.xlane.xlu0 %1076 }
 0x26f   :  { %1263 = vpush %v408_v28  ;;  %v736_v33 = vadd.f32 %v735_v7, %v734_v61  ;;  %v753_v55 = vadd.f32 %v752_v46, %v751_v0  ;;  %v1078_v16 = vrot.slane %v1077_v53, 4 }
 0x271   :  { %1265 = vpush %v736_v33  ;;  %v754_v31 = vrot.slane %v753_v55, 1  ;;  %v1079_v34 = vadd.f32 %v1078_v16, %v1077_v53 }
 0x272   :  { %v1368_v8 = vpop.eup %1367 }
 0x273   :  { %v600_v14 = vmul.f32 %v1368_v8, %v595_v11  ;;  %v755_v10 = vadd.f32 %v754_v31, %v753_v55  ;;  %v1080_v56 = vrot.slane %v1079_v34, 2 }
 0x275   :  { %v602_v32 = vsel %vm601_vm0, %v595_v11, %v600_v14  ;;  %1267 = vpush %v755_v10  ;;  %v1081_v41 = vadd.f32 %v1080_v56, %v1079_v34 }
 0x276   :  { %v605_v37 = vsel %vm603_vm4, %v604_v47, %v602_v32 }
 0x277   :  { %v606_v3 = vmul.f32 %v605_v37, %v423_v51  ;;  %v1082_v35 = vrot.slane %v1081_v41, 1 }
 0x279   :  { %v677_v15 = vadd.f32 %v676_v62, %v606_v3  ;;  %v1083_v48 = vadd.f32 %v1082_v35, %v1081_v41 }
 0x27b   :  { %v688_v18 = vadd.f32 %v686_v17, %v677_v15  ;;  %1269 = vpush %v1083_v48 }
 0x27c   :  { %v1097_v1 = vpop.xlane.xlu1 %1096 }
 0x27d   :  { %1369 = vtanh.f32 %v688_v18  ;;  %v1098_v57 = vrot.slane %v1097_v1, 4 }
 0x27f   :  { %v1099_v58 = vadd.f32 %v1098_v57, %v1097_v1 }
 0x281   :  { %v1100_v23 = vrot.slane %v1099_v58, 2 }
 0x283   :  { %v1101_v42 = vadd.f32 %v1100_v23, %v1099_v58 }
 0x285   :  { %v1102_v59 = vrot.slane %v1101_v42, 1 }
 0x287   :  { %v1370_v27 = vpop.eup %1369  ;;  %v1103_v45 = vadd.f32 %v1102_v59, %v1101_v42 }
 0x288   :  { %1229 = vmatmul.mubr.msk.f32.vlgmr.msra.gmra.mrb[4].mxu1 %vm377_vm3, %v1370_v27  ;;  %v872_v29 = vmul.f32 %v1370_v27, %v1370_v27 }
 0x289   :  { %1271 = vpush %v1103_v45 }
 0x28a   :  { %1218 = vmatmul.mubr.msk.f32.vlgmr.msra.gmra.mrb[4].mxu0 %vm377_vm3, %v872_v29 }
 0x295   :  { %s1262_s11 = spop %1261 }
 0x296   :  { %s390_s24 = smul.f32 0.5, %s1262_s11 }
 0x2a0   :  { %s1264_s12 = spop %1263 }
 0x2a1   :  { %s410_s25 = smul.f32 0.5, %s1264_s12 }
 0x2a2   :  { %s1266_s1 = spop %1265 }
 0x2a3   :  { %s412_s3 = sadd.f32 %s410_s25, %s390_s24  ;;  %s738_s26 = smul.f32 0.5, %s1266_s1 }
 0x2a5   :  { %s758_s10 = sadd.f32 %s738_s26, %s412_s3 }
 0x2a6   :  { %s1268_s27 = spop %1267 }
 0x2a7   :  { %s757_s6 = smul.f32 0.5, %s1268_s27 }
 0x2a9   :  { %s759_s8 = sadd.f32 %s758_s10, %s757_s6 }
 0x2ac   :  { %s1270_s23 = spop %1269 }
 0x2ad   :  { %s1085_s28 = smul.f32 0.5, %s1270_s23 }
 0x2af   :  { %s1106_s22 = sadd.f32 %s1085_s28, %s759_s8 }
 0x2ba   :  { %s1272_s14 = spop %1271 }
 0x2bb   :  { %s1105_s16 = smul.f32 0.5, %s1272_s14 }
 0x2bd   :  { %s1107_s29 = sadd.f32 %s1106_s22, %s1105_s16 }
 0x2bf   :  { %1110 = sst [smem:[#allocation13]] %s1107_s29 }
 0x2c0   :  { %1492 = shalt.err (!%p1489_p0)
}
 0x2c1   :  { %s1535_s2 = smov [#allocation13]   ;;  %s2147_s19 = sld [smem:[#allocation24_spill]]  ;;  %v1033_v47 = vrot.slane %v2061_v24, %v1842_v49 }
 0x2c2   :  { %1128 = dma.smem_to_hbm %s1535_s2, 16, %s2124_s20, [#allocation5]  }
 0x2c3   :  { %s1536_s20 = smov [#allocation12]  }
 0x2c4   :  { %s1117_s11 = sshll.u32 %s1536_s20, 4  ;;  %s1118_s11 = int_to_ptr.vmem [resolvable:$true] %s1117_s11 }
 0x2c5   :  { %s1493_s12 = scalar_lea.vmem %s1118_s11, 128  ;;  %p1498_p2 = scmp.lt.s32.totalorder %s1118_s11, %s1118_s11 }
 0x2c6   :  { %p1494_p1 = scmp.ne.s32.totalorder %s1118_s11, %s1493_s12  ;;  %p1499_p3 = scmp.lt.s32.totalorder %s1493_s12, %s1493_s12 }
 0x2c7   :  { %v770_v8 = vld [vmem:[%s2147_s19] sm:$0xff] }
 0x2c8   :  { %p1500_p4 = por %p1499_p3, %p1498_p2 }
 0x2ca   :  { %p1501_p5 = pnand %p1500_p4, %p1494_p1 }
 0x35b   :  { %v1023_v60 = vpop.f32.mrb[4].mxu1 }
 0x35c   :  { %v1230_v62 = vpop.f32.mrb[5].mxu1 }
 0x35d   :  { %v942_v2 = vpop.f32.mrb[4].mxu0 }
 0x35e   :  { %1371 = vrsqrt.f32 %v942_v2  ;;  %v1219_v11 = vpop.f32.mrb[5].mxu0  ;;  %vm948_vm3 = vcmp.eq.f32.partialorder %v942_v2, inf  ;;  %v951_v38 = vand.u32 2147483648, %v942_v2  ;;  %vm950_vm5 = vcmp.eq.f32.partialorder %v942_v2, 0.0 }
 0x368   :  { %v1372_v54 = vpop.eup %1371 }
 0x369   :  { %v947_v13 = vmul.f32 %v1372_v54, %v942_v2 }
 0x36b   :  { %v949_v9 = vsel %vm948_vm3, %v942_v2, %v947_v13 }
 0x36c   :  { %v952_v14 = vsel %vm950_vm5, %v951_v38, %v949_v9 }
 0x36d   :  { %v953_v51 = vmul.f32 %v952_v14, %v770_v8 }
 0x36f   :  { %v1024_v32 = vadd.f32 %v1023_v60, %v953_v51 }
 0x371   :  { %v1035_v37 = vadd.f32 %v1033_v47, %v1024_v32 }
 0x373   :  { %1108 = vst.msk [vmem:[#allocation12] sm:$0xff] %vm1068_vm15, %v1035_v37 }
 0x374   :  { %1504 = shalt.err (!%p1501_p5)
}
 0x375   :  { %s2148_s1 = sld [smem:[#allocation25_spill]] }
 0x37b   :  { %s1505_s3 = scalar_lea.hbm %s2148_s1, 128 }
 0x37c   :  { %p1506_p6 = scmp.ne.s32.totalorder %s2148_s1, %s1505_s3  ;;  %p1509_p7 = scmp.lt.u32.totalorder %s1505_s3, %s2148_s1 }
 0x37e   :  { %p1511_p8 = pnand %p1509_p7, %p1506_p6 }
 0x380   :  { %1514 = shalt.err (!%p1511_p8)
}
 0x381   :  { %1120 = dma.vmem_to_hbm [thread:$0]  %s1118_s11, 128, %s2148_s1, [#allocation4]  }
 0x382   :  { %1521 = dma.done.wait [#allocation4], 128  }
 0x383   :  { %1522 = vsyncadd [#allocation4], 4294967168 }
 0x384   :  { %1523 = dma.done.wait [#allocation5], 16  }
 0x385   :  { %1524 = vsyncadd [#allocation5], 4294967280 }
 0x386   :  { %1135 = sfence }
 0x387   :  { %1136 = vsyncpa [#allocation3], 1 }
 0x388   :  { %1137 = vsyncpa [#allocation7], 1 }
 0x389   :  { %1138 = vsyncpa [#allocation10], 1 }
 0x38a   :  { %1139 = vsyncpa [#allocation4], 1 }
 0x38b   :  { %1140 = vsyncpa [#allocation5], 1 }

</bundles_post_ra>
